<compile_context>
chip_gen: v5e
topology: v5e:2x2
jax: 0.10.0
libtpu: 0.0.40
codegen_flags: <defaults>
</compile_context>

<pallas_src>
import functools

import jax
import jax.numpy as jnp
from jax.experimental import pallas as pl
from jax.experimental.pallas import tpu as pltpu


def _vmem_limit_bytes():
    # ~75% of physical VMEM, clamped to [32 MiB, 100 MiB]; fallback 48 MiB.
    try:
        cap = pltpu.get_tpu_info().vmem_capacity_bytes
        return int(max(32 * 1024 * 1024, min(0.75 * cap, 100 * 1024 * 1024)))
    except Exception:
        return 48 * 1024 * 1024


_VMEM_LIMIT = _vmem_limit_bytes()


def _layer_norm(x, gamma, beta, eps):
    # x: (tq, D) f32, gamma/beta: (1, D); biased variance like torch.nn.LayerNorm
    mean = jnp.mean(x, axis=-1, keepdims=True)
    var = jnp.mean((x - mean) ** 2, axis=-1, keepdims=True)
    return (x - mean) * jax.lax.rsqrt(var + eps) * gamma + beta


def encoder_layer_kernel(
    x_ref, bias_ref,
    wqkv_ref, bqkv_ref, wo_ref, bo_ref, ln_g_ref, ln_b_ref,
    w1_ref, b1_ref, w2_ref, b2_ref, ffg_ref, ffb_ref,
    out_ref, attn_ref,
    q_sc, k_sc, v_sc, ctx_sc,
):
    f32 = jnp.float32
    bf16 = jnp.bfloat16

    n_heads, _, d_k = q_sc.shape
    d_v = v_sc.shape[-1]
    tq = out_ref.shape[1]
    inv_sqrt_dk = 1.0 / (float(d_k) ** 0.5)
    qi = pl.program_id(1)

    # ---- once per batch row: fused lane-dense QKV projection, scattered into
    #      per-head bf16 scratch that stays resident across this row's q-tiles.
    @pl.when(qi == 0)
    def _():
        xb = x_ref[0].astype(bf16)                                      # (S, D)
        qkv = jnp.dot(xb, wqkv_ref[...],
                      preferred_element_type=f32) + bqkv_ref[...]       # (S, 2Hdk+Hdv)
        qkv = qkv.astype(bf16)
        n_qk = n_heads * d_k
        for h in range(n_heads):                                        # static slices
            q_sc[h] = qkv[:, h * d_k:(h + 1) * d_k]
            k_sc[h] = qkv[:, n_qk + h * d_k:n_qk + (h + 1) * d_k]
            v_sc[h] = qkv[:, 2 * n_qk + h * d_v:2 * n_qk + (h + 1) * d_v]

    q_start = pl.multiple_of(qi * tq, tq)
    x_q = x_ref[0, pl.ds(q_start, tq), :]                               # (tq, D) f32
    q = q_sc[:, pl.ds(q_start, tq), :]                                  # (H, tq, dk) bf16

    # ---- scaled dot-product attention (full key axis for this q-tile) --------
    scores = jnp.einsum('hqd,hkd->hqk', q, k_sc[...],
                        preferred_element_type=f32) * inv_sqrt_dk       # (H, tq, S)
    scores = scores + bias_ref[0][None]                                 # additive -1e9 mask
    m = jnp.max(scores, axis=-1, keepdims=True)
    e = jnp.exp(scores - m)
    probs = e / jnp.sum(e, axis=-1, keepdims=True)       # exact normalization (exported)
    attn_ref[0] = probs                                                 # one slab store

    ctx = jnp.einsum('hqk,hkd->hqd', probs.astype(bf16), v_sc[...],
                     preferred_element_type=f32)                        # (H, tq, dv)
    for h in range(n_heads):                    # pack heads lane-dense -> (tq, H*dv)
        ctx_sc[:, h * d_v:(h + 1) * d_v] = ctx[h].astype(bf16)

    # ---- fused output projection: single (tq, H*dv) @ (H*dv, D) matmul -------
    mha = jnp.dot(ctx_sc[...], wo_ref[...],
                  preferred_element_type=f32) + bo_ref[...]             # (tq, D)

    ln_g = ln_g_ref[...]
    ln_b = ln_b_ref[...]

    # out1 = LayerNorm(x + attn(x))                         (eps=1e-5)
    out1 = _layer_norm(x_q + mha, ln_g, ln_b, 1e-5)

    # FFN(out1) = LayerNorm_ff(W2 relu(W1 out1 + b1) + b2 + out1)   (eps=1e-6)
    h1 = jnp.maximum(
        jnp.dot(out1.astype(bf16), w1_ref[...],
                preferred_element_type=f32) + b1_ref[...], 0.0)         # (tq, d_ff)
    h2 = jnp.dot(h1.astype(bf16), w2_ref[...],
                 preferred_element_type=f32) + b2_ref[...]              # (tq, D)
    ffn_out = _layer_norm(h2 + out1, ffg_ref[...], ffb_ref[...], 1e-6)

    # out = LayerNorm(out1 + FFN(out1))                     (eps=1e-5, same LN)
    out_ref[0] = _layer_norm(out1 + ffn_out, ln_g, ln_b, 1e-5).astype(out_ref.dtype)


@functools.partial(jax.jit, static_argnums=(3, 4))
def encoder_layer(x, mask, params, n_heads, tq):
    B, S, D = x.shape
    H = n_heads
    d_k = params["wq"].shape[1] // H
    d_v = params["wv"].shape[1] // H
    assert S % tq == 0 and tq % 8 == 0
    bf16 = jnp.bfloat16

    # Host-side packing: one fused QKV weight (lane-dense N = 2*H*dk + H*dv);
    # the output projection stays as the original (H*dv, D) matrix; bf16 weights.
    wqkv = jnp.concatenate(
        [params["wq"], params["wk"], params["wv"]], axis=1).astype(bf16)
    bqkv = jnp.concatenate([params["bq"], params["bk"], params["bv"]], axis=1)
    wo = params["wo"].astype(bf16)
    w1 = params["w1"].astype(bf16)
    w2 = params["w2"].astype(bf16)

    # Pre-baked additive mask bias (1.0 == masked key -> -1e9), tiled per q-tile.
    attn_bias = mask.astype(jnp.float32) * (-1e9)                       # (B, S, S)

    weights = (wqkv, bqkv, wo, params["bo"], params["ln_g"], params["ln_b"],
               w1, params["b1"], w2, params["b2"], params["ffg"], params["ffb"])

    def full_spec(a):
        zeros = (0,) * a.ndim      # grid-invariant: fetched once, never re-DMA'd
        return pl.BlockSpec(a.shape, lambda b, q, zeros=zeros: zeros)

    in_specs = [
        pl.BlockSpec((1, S, D), lambda b, q: (b, 0, 0)),   # x: full row, once per b
        pl.BlockSpec((1, tq, S), lambda b, q: (b, q, 0)),  # additive mask bias tile
    ] + [full_spec(w) for w in weights]

    out_specs = (
        pl.BlockSpec((1, tq, D), lambda b, q: (b, q, 0)),
        pl.BlockSpec((1, H, tq, S), lambda b, q: (b, 0, q, 0)),
    )
    out_shape = (
        jax.ShapeDtypeStruct((B, S, D), x.dtype),
        jax.ShapeDtypeStruct((B, H, S, S), jnp.float32),
    )
    scratch_shapes = [
        pltpu.VMEM((H, S, d_k), bf16),     # Q (resident per batch row)
        pltpu.VMEM((H, S, d_k), bf16),     # K
        pltpu.VMEM((H, S, d_v), bf16),     # V
        pltpu.VMEM((tq, H * d_v), bf16),   # packed per-tile context
    ]

    return pl.pallas_call(
        encoder_layer_kernel,
        grid=(B, S // tq),
        in_specs=in_specs,
        out_specs=out_specs,
        out_shape=out_shape,
        scratch_shapes=scratch_shapes,
        compiler_params=pltpu.CompilerParams(
            # q-tile axis must be sequential ("arbitrary"): Q/K/V scratch written
            # at q-tile 0 is reused by the later tiles of the same batch row.
            dimension_semantics=("parallel", "arbitrary"),
            vmem_limit_bytes=_VMEM_LIMIT),
    )(x, attn_bias, *weights)


def encoder_layer_reference(x, mask, params, n_heads):
    # Pure-JAX reference (f32) of the same forward pass, for a numerics check.
    B, S, _ = x.shape
    H = n_heads
    d_k = params["wq"].shape[1] // H
    d_v = params["wv"].shape[1] // H

    def split_heads(t, d):
        return t.reshape(B, S, H, d).transpose(0, 2, 1, 3)

    q = split_heads(x @ params["wq"] + params["bq"], d_k)
    k = split_heads(x @ params["wk"] + params["bk"], d_k)
    v = split_heads(x @ params["wv"] + params["bv"], d_v)
    scores = jnp.einsum('bhqd,bhkd->bhqk', q, k) * (1.0 / (d_k ** 0.5))
    scores = scores - mask[:, None].astype(jnp.float32) * 1e9
    attn = jax.nn.softmax(scores, axis=-1)
    ctx = jnp.einsum('bhqk,bhkd->bhqd', attn, v)
    ctx = ctx.transpose(0, 2, 1, 3).reshape(B, S, H * d_v)
    mha = ctx @ params["wo"] + params["bo"]

    def ln(y, g, b, eps):
        mu = y.mean(-1, keepdims=True)
        var = ((y - mu) ** 2).mean(-1, keepdims=True)
        return (y - mu) * jax.lax.rsqrt(var + eps) * g + b

    out1 = ln(x + mha, params["ln_g"], params["ln_b"], 1e-5)
    h1 = jax.nn.relu(out1 @ params["w1"] + params["b1"])
    h2 = h1 @ params["w2"] + params["b2"]
    ffn = ln(h2 + out1, params["ffg"], params["ffb"], 1e-6)
    out = ln(out1 + ffn, params["ln_g"], params["ln_b"], 1e-5)
    return out, attn


def make_params(key, d_model, d_k, d_v, n_heads, d_ff):
    ks = jax.random.split(key, 8)
    s = 0.05
    return {
        "wq": s * jax.random.normal(ks[0], (d_model, n_heads * d_k), jnp.float32),
        "bq": jnp.zeros((1, n_heads * d_k), jnp.float32),
        "wk": s * jax.random.normal(ks[1], (d_model, n_heads * d_k), jnp.float32),
        "bk": jnp.zeros((1, n_heads * d_k), jnp.float32),
        "wv": s * jax.random.normal(ks[2], (d_model, n_heads * d_v), jnp.float32),
        "bv": jnp.zeros((1, n_heads * d_v), jnp.float32),
        "wo": s * jax.random.normal(ks[3], (n_heads * d_v, d_model), jnp.float32),
        "bo": jnp.zeros((1, d_model), jnp.float32),
        "ln_g": jnp.ones((1, d_model), jnp.float32),
        "ln_b": jnp.zeros((1, d_model), jnp.float32),
        "w1": s * jax.random.normal(ks[4], (d_model, d_ff), jnp.float32),
        "b1": jnp.zeros((1, d_ff), jnp.float32),
        "w2": s * jax.random.normal(ks[5], (d_ff, d_model), jnp.float32),
        "b2": jnp.zeros((1, d_model), jnp.float32),
        "ffg": jnp.ones((1, d_model), jnp.float32),
        "ffb": jnp.zeros((1, d_model), jnp.float32),
    }


if __name__ == "__main__":
    B, S = 2, 16
    d_model, n_heads, d_k, d_v, d_ff = 32, 4, 8, 8, 64
    tq = 8   # two q-tiles per batch row -> exercises the resident-K/V path

    key = jax.random.PRNGKey(0)
    kx, kp = jax.random.split(key)
    x = jax.random.normal(kx, (B, S, d_model), jnp.float32)

    # key-padding mask: batch 1 has its last 2 tokens masked out (1.0 == masked)
    mask = jnp.zeros((B, S, S), jnp.float32)
    mask = mask.at[1, :, S - 2:].set(1.0)

    params = make_params(kp, d_model, d_k, d_v, n_heads, d_ff)

    out, attn = encoder_layer(x, mask, params, n_heads, tq)
    jax.block_until_ready((out, attn))

    assert out.shape == (B, S, d_model)
    assert attn.shape == (B, n_heads, S, S)
    assert bool(jnp.all(jnp.isfinite(out)))
    assert bool(jnp.all(jnp.isfinite(attn)))

    ref_out, ref_attn = encoder_layer_reference(x, mask, params, n_heads)
    err_out = float(jnp.max(jnp.abs(out - ref_out)))
    err_attn = float(jnp.max(jnp.abs(attn - ref_attn)))
    assert err_out < 1e-1, f"out mismatch: {err_out}"
    assert err_attn < 5e-2, f"attn mismatch: {err_attn}"
    assert float(jnp.max(attn[1, :, :, S - 2:])) < 1e-6  # masked keys -> ~0 prob

    print("KERNEL_OK")
</pallas_src>

<mosaic_0001>
module attributes {stable_mosaic.version = 11 : i64} {
  func.func @encoder_layer_kernel(%arg0: i32, %arg1: i32, %arg2: memref<1x16x32xf32, #tpu.memory_space<vmem>>, %arg3: memref<1x8x16xf32, #tpu.memory_space<vmem>>, %arg4: memref<32x96xbf16, #tpu.memory_space<vmem>>, %arg5: memref<1x96xf32, #tpu.memory_space<vmem>>, %arg6: memref<32x32xbf16, #tpu.memory_space<vmem>>, %arg7: memref<1x32xf32, #tpu.memory_space<vmem>>, %arg8: memref<1x32xf32, #tpu.memory_space<vmem>>, %arg9: memref<1x32xf32, #tpu.memory_space<vmem>>, %arg10: memref<32x64xbf16, #tpu.memory_space<vmem>>, %arg11: memref<1x64xf32, #tpu.memory_space<vmem>>, %arg12: memref<64x32xbf16, #tpu.memory_space<vmem>>, %arg13: memref<1x32xf32, #tpu.memory_space<vmem>>, %arg14: memref<1x32xf32, #tpu.memory_space<vmem>>, %arg15: memref<1x32xf32, #tpu.memory_space<vmem>>, %arg16: memref<1x8x32xf32, #tpu.memory_space<vmem>>, %arg17: memref<1x4x8x16xf32, #tpu.memory_space<vmem>>, %arg18: memref<4x16x8xbf16, #tpu.memory_space<vmem>>, %arg19: memref<4x16x8xbf16, #tpu.memory_space<vmem>>, %arg20: memref<4x16x8xbf16, #tpu.memory_space<vmem>>, %arg21: memref<8x32xbf16, #tpu.memory_space<vmem>>) attributes {dimension_semantics = [#tpu.dimension_semantics<parallel>, #tpu.dimension_semantics<arbitrary>], iteration_bounds = array<i64: 2, 2>, scalar_prefetch = 0 : i64, scratch_operands = 4 : i64, tpu.core_type = #tpu.core_type<tc>, window_params = [{transform_indices = @transform_0, window_bounds = array<i64: 1, 16, 32>}, {transform_indices = @transform_1, window_bounds = array<i64: 1, 8, 16>}, {pipeline_mode = #tpu.pipeline_mode<synchronous>, transform_indices = @transform_2, window_bounds = array<i64: 32, 96>}, {pipeline_mode = #tpu.pipeline_mode<synchronous>, transform_indices = @transform_3, window_bounds = array<i64: 1, 96>}, {pipeline_mode = #tpu.pipeline_mode<synchronous>, transform_indices = @transform_4, window_bounds = array<i64: 32, 32>}, {pipeline_mode = #tpu.pipeline_mode<synchronous>, transform_indices = @transform_5, window_bounds = array<i64: 1, 32>}, {pipeline_mode = #tpu.pipeline_mode<synchronous>, transform_indices = @transform_6, window_bounds = array<i64: 1, 32>}, {pipeline_mode = #tpu.pipeline_mode<synchronous>, transform_indices = @transform_7, window_bounds = array<i64: 1, 32>}, {pipeline_mode = #tpu.pipeline_mode<synchronous>, transform_indices = @transform_8, window_bounds = array<i64: 32, 64>}, {pipeline_mode = #tpu.pipeline_mode<synchronous>, transform_indices = @transform_9, window_bounds = array<i64: 1, 64>}, {pipeline_mode = #tpu.pipeline_mode<synchronous>, transform_indices = @transform_10, window_bounds = array<i64: 64, 32>}, {pipeline_mode = #tpu.pipeline_mode<synchronous>, transform_indices = @transform_11, window_bounds = array<i64: 1, 32>}, {pipeline_mode = #tpu.pipeline_mode<synchronous>, transform_indices = @transform_12, window_bounds = array<i64: 1, 32>}, {pipeline_mode = #tpu.pipeline_mode<synchronous>, transform_indices = @transform_13, window_bounds = array<i64: 1, 32>}, {transform_indices = @transform_14, window_bounds = array<i64: 1, 8, 32>}, {transform_indices = @transform_15, window_bounds = array<i64: 1, 4, 8, 16>}]} {
    %c0_i32 = arith.constant 0 : i32
    %0 = arith.cmpi eq, %arg1, %c0_i32 : i32
    %1 = arith.extui %0 : i1 to i32
    %c0_i32_0 = arith.constant 0 : i32
    %2 = arith.cmpi ne, %1, %c0_i32_0 : i32
    scf.if %2 {
      %c0_70 = arith.constant 0 : index
      %c0_71 = arith.constant 0 : index
      %c0_72 = arith.constant 0 : index
      %146 = vector.load %arg2[%c0_70, %c0_71, %c0_72] : memref<1x16x32xf32, #tpu.memory_space<vmem>>, vector<1x16x32xf32>
      %147 = vector.shape_cast %146 : vector<1x16x32xf32> to vector<16x32xf32>
      %148 = arith.truncf %147 : vector<16x32xf32> to vector<16x32xbf16>
      %c0_73 = arith.constant 0 : index
      %c0_74 = arith.constant 0 : index
      %149 = vector.load %arg4[%c0_73, %c0_74] : memref<32x96xbf16, #tpu.memory_space<vmem>>, vector<32x96xbf16>
      %cst_75 = arith.constant dense<0.000000e+00> : vector<16x96xf32>
      %150 = tpu.matmul %148, %149, %cst_75 {dimension_numbers = #tpu.dot_dimension_numbers<[1], [0], [0], [1], [0, 0, 1, 1], [], []>} : vector<16x32xbf16>, vector<32x96xbf16>, vector<16x96xf32> -> vector<16x96xf32>
      %c0_76 = arith.constant 0 : index
      %c0_77 = arith.constant 0 : index
      %151 = vector.load %arg5[%c0_76, %c0_77] : memref<1x96xf32, #tpu.memory_space<vmem>>, vector<1x96xf32>
      %152 = vector.broadcast %151 : vector<1x96xf32> to vector<16x96xf32>
      %153 = arith.addf %150, %152 : vector<16x96xf32>
      %154 = arith.truncf %153 : vector<16x96xf32> to vector<16x96xbf16>
      %155 = vector.extract_strided_slice %154 {offsets = [0, 0], sizes = [16, 8], strides = [1, 1]} : vector<16x96xbf16> to vector<16x8xbf16>
      %c0_78 = arith.constant 0 : index
      %c0_79 = arith.constant 0 : index
      %c0_80 = arith.constant 0 : index
      %156 = vector.load %arg18[%c0_78, %c0_79, %c0_80] : memref<4x16x8xbf16, #tpu.memory_space<vmem>>, vector<1x16x8xbf16>
      %157 = vector.shape_cast %156 : vector<1x16x8xbf16> to vector<16x8xbf16>
      %158 = vector.shape_cast %155 : vector<16x8xbf16> to vector<1x16x8xbf16>
      tpu.vector_store %arg18[%c0_78, %c0_79, %c0_80], %158 {strides = array<i32>} : memref<4x16x8xbf16, #tpu.memory_space<vmem>>, vector<1x16x8xbf16>,
      %159 = vector.extract_strided_slice %154 {offsets = [0, 32], sizes = [16, 8], strides = [1, 1]} : vector<16x96xbf16> to vector<16x8xbf16>
      %c0_81 = arith.constant 0 : index
      %c0_82 = arith.constant 0 : index
      %c0_83 = arith.constant 0 : index
      %160 = vector.load %arg19[%c0_81, %c0_82, %c0_83] : memref<4x16x8xbf16, #tpu.memory_space<vmem>>, vector<1x16x8xbf16>
      %161 = vector.shape_cast %160 : vector<1x16x8xbf16> to vector<16x8xbf16>
      %162 = vector.shape_cast %159 : vector<16x8xbf16> to vector<1x16x8xbf16>
      tpu.vector_store %arg19[%c0_81, %c0_82, %c0_83], %162 {strides = array<i32>} : memref<4x16x8xbf16, #tpu.memory_space<vmem>>, vector<1x16x8xbf16>,
      %163 = vector.extract_strided_slice %154 {offsets = [0, 64], sizes = [16, 8], strides = [1, 1]} : vector<16x96xbf16> to vector<16x8xbf16>
      %c0_84 = arith.constant 0 : index
      %c0_85 = arith.constant 0 : index
      %c0_86 = arith.constant 0 : index
      %164 = vector.load %arg20[%c0_84, %c0_85, %c0_86] : memref<4x16x8xbf16, #tpu.memory_space<vmem>>, vector<1x16x8xbf16>
      %165 = vector.shape_cast %164 : vector<1x16x8xbf16> to vector<16x8xbf16>
      %166 = vector.shape_cast %163 : vector<16x8xbf16> to vector<1x16x8xbf16>
      tpu.vector_store %arg20[%c0_84, %c0_85, %c0_86], %166 {strides = array<i32>} : memref<4x16x8xbf16, #tpu.memory_space<vmem>>, vector<1x16x8xbf16>,
      %167 = vector.extract_strided_slice %154 {offsets = [0, 8], sizes = [16, 8], strides = [1, 1]} : vector<16x96xbf16> to vector<16x8xbf16>
      %c1 = arith.constant 1 : index
      %c0_87 = arith.constant 0 : index
      %c0_88 = arith.constant 0 : index
      %168 = vector.load %arg18[%c1, %c0_87, %c0_88] : memref<4x16x8xbf16, #tpu.memory_space<vmem>>, vector<1x16x8xbf16>
      %169 = vector.shape_cast %168 : vector<1x16x8xbf16> to vector<16x8xbf16>
      %170 = vector.shape_cast %167 : vector<16x8xbf16> to vector<1x16x8xbf16>
      tpu.vector_store %arg18[%c1, %c0_87, %c0_88], %170 {strides = array<i32>} : memref<4x16x8xbf16, #tpu.memory_space<vmem>>, vector<1x16x8xbf16>,
      %171 = vector.extract_strided_slice %154 {offsets = [0, 40], sizes = [16, 8], strides = [1, 1]} : vector<16x96xbf16> to vector<16x8xbf16>
      %c1_89 = arith.constant 1 : index
      %c0_90 = arith.constant 0 : index
      %c0_91 = arith.constant 0 : index
      %172 = vector.load %arg19[%c1_89, %c0_90, %c0_91] : memref<4x16x8xbf16, #tpu.memory_space<vmem>>, vector<1x16x8xbf16>
      %173 = vector.shape_cast %172 : vector<1x16x8xbf16> to vector<16x8xbf16>
      %174 = vector.shape_cast %171 : vector<16x8xbf16> to vector<1x16x8xbf16>
      tpu.vector_store %arg19[%c1_89, %c0_90, %c0_91], %174 {strides = array<i32>} : memref<4x16x8xbf16, #tpu.memory_space<vmem>>, vector<1x16x8xbf16>,
      %175 = vector.extract_strided_slice %154 {offsets = [0, 72], sizes = [16, 8], strides = [1, 1]} : vector<16x96xbf16> to vector<16x8xbf16>
      %c1_92 = arith.constant 1 : index
      %c0_93 = arith.constant 0 : index
      %c0_94 = arith.constant 0 : index
      %176 = vector.load %arg20[%c1_92, %c0_93, %c0_94] : memref<4x16x8xbf16, #tpu.memory_space<vmem>>, vector<1x16x8xbf16>
      %177 = vector.shape_cast %176 : vector<1x16x8xbf16> to vector<16x8xbf16>
      %178 = vector.shape_cast %175 : vector<16x8xbf16> to vector<1x16x8xbf16>
      tpu.vector_store %arg20[%c1_92, %c0_93, %c0_94], %178 {strides = array<i32>} : memref<4x16x8xbf16, #tpu.memory_space<vmem>>, vector<1x16x8xbf16>,
      %179 = vector.extract_strided_slice %154 {offsets = [0, 16], sizes = [16, 8], strides = [1, 1]} : vector<16x96xbf16> to vector<16x8xbf16>
      %c2 = arith.constant 2 : index
      %c0_95 = arith.constant 0 : index
      %c0_96 = arith.constant 0 : index
      %180 = vector.load %arg18[%c2, %c0_95, %c0_96] : memref<4x16x8xbf16, #tpu.memory_space<vmem>>, vector<1x16x8xbf16>
      %181 = vector.shape_cast %180 : vector<1x16x8xbf16> to vector<16x8xbf16>
      %182 = vector.shape_cast %179 : vector<16x8xbf16> to vector<1x16x8xbf16>
      tpu.vector_store %arg18[%c2, %c0_95, %c0_96], %182 {strides = array<i32>} : memref<4x16x8xbf16, #tpu.memory_space<vmem>>, vector<1x16x8xbf16>,
      %183 = vector.extract_strided_slice %154 {offsets = [0, 48], sizes = [16, 8], strides = [1, 1]} : vector<16x96xbf16> to vector<16x8xbf16>
      %c2_97 = arith.constant 2 : index
      %c0_98 = arith.constant 0 : index
      %c0_99 = arith.constant 0 : index
      %184 = vector.load %arg19[%c2_97, %c0_98, %c0_99] : memref<4x16x8xbf16, #tpu.memory_space<vmem>>, vector<1x16x8xbf16>
      %185 = vector.shape_cast %184 : vector<1x16x8xbf16> to vector<16x8xbf16>
      %186 = vector.shape_cast %183 : vector<16x8xbf16> to vector<1x16x8xbf16>
      tpu.vector_store %arg19[%c2_97, %c0_98, %c0_99], %186 {strides = array<i32>} : memref<4x16x8xbf16, #tpu.memory_space<vmem>>, vector<1x16x8xbf16>,
      %187 = vector.extract_strided_slice %154 {offsets = [0, 80], sizes = [16, 8], strides = [1, 1]} : vector<16x96xbf16> to vector<16x8xbf16>
      %c2_100 = arith.constant 2 : index
      %c0_101 = arith.constant 0 : index
      %c0_102 = arith.constant 0 : index
      %188 = vector.load %arg20[%c2_100, %c0_101, %c0_102] : memref<4x16x8xbf16, #tpu.memory_space<vmem>>, vector<1x16x8xbf16>
      %189 = vector.shape_cast %188 : vector<1x16x8xbf16> to vector<16x8xbf16>
      %190 = vector.shape_cast %187 : vector<16x8xbf16> to vector<1x16x8xbf16>
      tpu.vector_store %arg20[%c2_100, %c0_101, %c0_102], %190 {strides = array<i32>} : memref<4x16x8xbf16, #tpu.memory_space<vmem>>, vector<1x16x8xbf16>,
      %191 = vector.extract_strided_slice %154 {offsets = [0, 24], sizes = [16, 8], strides = [1, 1]} : vector<16x96xbf16> to vector<16x8xbf16>
      %c3 = arith.constant 3 : index
      %c0_103 = arith.constant 0 : index
      %c0_104 = arith.constant 0 : index
      %192 = vector.load %arg18[%c3, %c0_103, %c0_104] : memref<4x16x8xbf16, #tpu.memory_space<vmem>>, vector<1x16x8xbf16>
      %193 = vector.shape_cast %192 : vector<1x16x8xbf16> to vector<16x8xbf16>
      %194 = vector.shape_cast %191 : vector<16x8xbf16> to vector<1x16x8xbf16>
      tpu.vector_store %arg18[%c3, %c0_103, %c0_104], %194 {strides = array<i32>} : memref<4x16x8xbf16, #tpu.memory_space<vmem>>, vector<1x16x8xbf16>,
      %195 = vector.extract_strided_slice %154 {offsets = [0, 56], sizes = [16, 8], strides = [1, 1]} : vector<16x96xbf16> to vector<16x8xbf16>
      %c3_105 = arith.constant 3 : index
      %c0_106 = arith.constant 0 : index
      %c0_107 = arith.constant 0 : index
      %196 = vector.load %arg19[%c3_105, %c0_106, %c0_107] : memref<4x16x8xbf16, #tpu.memory_space<vmem>>, vector<1x16x8xbf16>
      %197 = vector.shape_cast %196 : vector<1x16x8xbf16> to vector<16x8xbf16>
      %198 = vector.shape_cast %195 : vector<16x8xbf16> to vector<1x16x8xbf16>
      tpu.vector_store %arg19[%c3_105, %c0_106, %c0_107], %198 {strides = array<i32>} : memref<4x16x8xbf16, #tpu.memory_space<vmem>>, vector<1x16x8xbf16>,
      %199 = vector.extract_strided_slice %154 {offsets = [0, 88], sizes = [16, 8], strides = [1, 1]} : vector<16x96xbf16> to vector<16x8xbf16>
      %c3_108 = arith.constant 3 : index
      %c0_109 = arith.constant 0 : index
      %c0_110 = arith.constant 0 : index
      %200 = vector.load %arg20[%c3_108, %c0_109, %c0_110] : memref<4x16x8xbf16, #tpu.memory_space<vmem>>, vector<1x16x8xbf16>
      %201 = vector.shape_cast %200 : vector<1x16x8xbf16> to vector<16x8xbf16>
      %202 = vector.shape_cast %199 : vector<16x8xbf16> to vector<1x16x8xbf16>
      tpu.vector_store %arg20[%c3_108, %c0_109, %c0_110], %202 {strides = array<i32>} : memref<4x16x8xbf16, #tpu.memory_space<vmem>>, vector<1x16x8xbf16>,
    } else {
    }
    %c8_i32 = arith.constant 8 : i32
    %3 = arith.muli %arg1, %c8_i32 : i32
    %4 = tpu.assume_multiple %3, 8 : i32
    %c0 = arith.constant 0 : index
    %5 = arith.index_cast %4 : i32 to index
    %c0_1 = arith.constant 0 : index
    %6 = vector.load %arg2[%c0, %5, %c0_1] : memref<1x16x32xf32, #tpu.memory_space<vmem>>, vector<1x8x32xf32>
    %7 = vector.shape_cast %6 : vector<1x8x32xf32> to vector<8x32xf32>
    %c0_2 = arith.constant 0 : index
    %8 = arith.index_cast %4 : i32 to index
    %c0_3 = arith.constant 0 : index
    %9 = vector.load %arg18[%c0_2, %8, %c0_3] : memref<4x16x8xbf16, #tpu.memory_space<vmem>>, vector<4x8x8xbf16>
    %c0_4 = arith.constant 0 : index
    %c0_5 = arith.constant 0 : index
    %c0_6 = arith.constant 0 : index
    %10 = vector.load %arg19[%c0_4, %c0_5, %c0_6] : memref<4x16x8xbf16, #tpu.memory_space<vmem>>, vector<4x16x8xbf16>
    "tpu.trace_start"() <{level = 10 : i32, message = "hqd,hkd->hqk"}> : () -> ()
    %cst = arith.constant dense<0.000000e+00> : vector<4x8x16xf32>
    %11 = tpu.matmul %9, %10, %cst {dimension_numbers = #tpu.dot_dimension_numbers<[2], [2], [1], [1], [0, 0, 0, 1, 1, 1], [0], [0]>} : vector<4x8x8xbf16>, vector<4x16x8xbf16>, vector<4x8x16xf32> -> vector<4x8x16xf32>
    "tpu.trace_stop"() : () -> ()
    %cst_7 = arith.constant 0.353553385 : f32
    %12 = vector.broadcast %cst_7 : f32 to vector<4x8x16xf32>
    %13 = arith.mulf %11, %12 : vector<4x8x16xf32>
    %c0_8 = arith.constant 0 : index
    %c0_9 = arith.constant 0 : index
    %c0_10 = arith.constant 0 : index
    %14 = vector.load %arg3[%c0_8, %c0_9, %c0_10] : memref<1x8x16xf32, #tpu.memory_space<vmem>>, vector<1x8x16xf32>
    %15 = vector.shape_cast %14 : vector<1x8x16xf32> to vector<8x16xf32>
    %16 = vector.shape_cast %15 : vector<8x16xf32> to vector<1x8x16xf32>
    %17 = vector.broadcast %16 : vector<1x8x16xf32> to vector<4x8x16xf32>
    %18 = arith.addf %13, %17 : vector<4x8x16xf32>
    %cst_11 = arith.constant dense<0xFF800000> : vector<4x8xf32>
    %19 = vector.multi_reduction <maximumf>, %18, %cst_11 [2] : vector<4x8x16xf32> to vector<4x8xf32>
    %20 = vector.shape_cast %19 : vector<4x8xf32> to vector<4x8x1xf32>
    %21 = vector.broadcast %20 : vector<4x8x1xf32> to vector<4x8x16xf32>
    %22 = arith.subf %18, %21 : vector<4x8x16xf32>
    %23 = math.exp %22 : vector<4x8x16xf32>
    %cst_12 = arith.constant dense<0.000000e+00> : vector<4x8xf32>
    %24 = vector.multi_reduction <add>, %23, %cst_12 [2] : vector<4x8x16xf32> to vector<4x8xf32>
    %25 = vector.shape_cast %24 : vector<4x8xf32> to vector<4x8x1xf32>
    %26 = vector.broadcast %25 : vector<4x8x1xf32> to vector<4x8x16xf32>
    %27 = arith.divf %23, %26 : vector<4x8x16xf32>
    %c0_13 = arith.constant 0 : index
    %c0_14 = arith.constant 0 : index
    %c0_15 = arith.constant 0 : index
    %c0_16 = arith.constant 0 : index
    %28 = vector.load %arg17[%c0_13, %c0_14, %c0_15, %c0_16] : memref<1x4x8x16xf32, #tpu.memory_space<vmem>>, vector<1x4x8x16xf32>
    %29 = vector.shape_cast %28 : vector<1x4x8x16xf32> to vector<4x8x16xf32>
    %30 = vector.shape_cast %27 : vector<4x8x16xf32> to vector<1x4x8x16xf32>
    tpu.vector_store %arg17[%c0_13, %c0_14, %c0_15, %c0_16], %30 {strides = array<i32>} : memref<1x4x8x16xf32, #tpu.memory_space<vmem>>, vector<1x4x8x16xf32>,
    %31 = arith.truncf %27 : vector<4x8x16xf32> to vector<4x8x16xbf16>
    %c0_17 = arith.constant 0 : index
    %c0_18 = arith.constant 0 : index
    %c0_19 = arith.constant 0 : index
    %32 = vector.load %arg20[%c0_17, %c0_18, %c0_19] : memref<4x16x8xbf16, #tpu.memory_space<vmem>>, vector<4x16x8xbf16>
    "tpu.trace_start"() <{level = 10 : i32, message = "hqk,hkd->hqd"}> : () -> ()
    %cst_20 = arith.constant dense<0.000000e+00> : vector<4x8x8xf32>
    %33 = tpu.matmul %31, %32, %cst_20 {dimension_numbers = #tpu.dot_dimension_numbers<[2], [1], [1], [2], [0, 0, 0, 1, 1, 2], [0], [0]>} : vector<4x8x16xbf16>, vector<4x16x8xbf16>, vector<4x8x8xf32> -> vector<4x8x8xf32>
    "tpu.trace_stop"() : () -> ()
    %34 = vector.extract_strided_slice %33 {offsets = [0, 0, 0], sizes = [1, 8, 8], strides = [1, 1, 1]} : vector<4x8x8xf32> to vector<1x8x8xf32>
    %35 = vector.shape_cast %34 : vector<1x8x8xf32> to vector<8x8xf32>
    %36 = arith.truncf %35 : vector<8x8xf32> to vector<8x8xbf16>
    %c0_21 = arith.constant 0 : index
    %c0_22 = arith.constant 0 : index
    %37 = vector.load %arg21[%c0_21, %c0_22] : memref<8x32xbf16, #tpu.memory_space<vmem>>, vector<8x8xbf16>
    tpu.vector_store %arg21[%c0_21, %c0_22], %36 {strides = array<i32>} : memref<8x32xbf16, #tpu.memory_space<vmem>>, vector<8x8xbf16>,
    %38 = vector.extract_strided_slice %33 {offsets = [1, 0, 0], sizes = [1, 8, 8], strides = [1, 1, 1]} : vector<4x8x8xf32> to vector<1x8x8xf32>
    %39 = vector.shape_cast %38 : vector<1x8x8xf32> to vector<8x8xf32>
    %40 = arith.truncf %39 : vector<8x8xf32> to vector<8x8xbf16>
    %c0_23 = arith.constant 0 : index
    %c8 = arith.constant 8 : index
    %41 = vector.load %arg21[%c0_23, %c8] : memref<8x32xbf16, #tpu.memory_space<vmem>>, vector<8x8xbf16>
    tpu.vector_store %arg21[%c0_23, %c8], %40 {strides = array<i32>} : memref<8x32xbf16, #tpu.memory_space<vmem>>, vector<8x8xbf16>,
    %42 = vector.extract_strided_slice %33 {offsets = [2, 0, 0], sizes = [1, 8, 8], strides = [1, 1, 1]} : vector<4x8x8xf32> to vector<1x8x8xf32>
    %43 = vector.shape_cast %42 : vector<1x8x8xf32> to vector<8x8xf32>
    %44 = arith.truncf %43 : vector<8x8xf32> to vector<8x8xbf16>
    %c0_24 = arith.constant 0 : index
    %c16 = arith.constant 16 : index
    %45 = vector.load %arg21[%c0_24, %c16] : memref<8x32xbf16, #tpu.memory_space<vmem>>, vector<8x8xbf16>
    tpu.vector_store %arg21[%c0_24, %c16], %44 {strides = array<i32>} : memref<8x32xbf16, #tpu.memory_space<vmem>>, vector<8x8xbf16>,
    %46 = vector.extract_strided_slice %33 {offsets = [3, 0, 0], sizes = [1, 8, 8], strides = [1, 1, 1]} : vector<4x8x8xf32> to vector<1x8x8xf32>
    %47 = vector.shape_cast %46 : vector<1x8x8xf32> to vector<8x8xf32>
    %48 = arith.truncf %47 : vector<8x8xf32> to vector<8x8xbf16>
    %c0_25 = arith.constant 0 : index
    %c24 = arith.constant 24 : index
    %49 = vector.load %arg21[%c0_25, %c24] : memref<8x32xbf16, #tpu.memory_space<vmem>>, vector<8x8xbf16>
    tpu.vector_store %arg21[%c0_25, %c24], %48 {strides = array<i32>} : memref<8x32xbf16, #tpu.memory_space<vmem>>, vector<8x8xbf16>,
    %c0_26 = arith.constant 0 : index
    %c0_27 = arith.constant 0 : index
    %50 = vector.load %arg21[%c0_26, %c0_27] : memref<8x32xbf16, #tpu.memory_space<vmem>>, vector<8x32xbf16>
    %c0_28 = arith.constant 0 : index
    %c0_29 = arith.constant 0 : index
    %51 = vector.load %arg6[%c0_28, %c0_29] : memref<32x32xbf16, #tpu.memory_space<vmem>>, vector<32x32xbf16>
    %cst_30 = arith.constant dense<0.000000e+00> : vector<8x32xf32>
    %52 = tpu.matmul %50, %51, %cst_30 {dimension_numbers = #tpu.dot_dimension_numbers<[1], [0], [0], [1], [0, 0, 1, 1], [], []>} : vector<8x32xbf16>, vector<32x32xbf16>, vector<8x32xf32> -> vector<8x32xf32>
    %c0_31 = arith.constant 0 : index
    %c0_32 = arith.constant 0 : index
    %53 = vector.load %arg7[%c0_31, %c0_32] : memref<1x32xf32, #tpu.memory_space<vmem>>, vector<1x32xf32>
    %54 = vector.broadcast %53 : vector<1x32xf32> to vector<8x32xf32>
    %55 = arith.addf %52, %54 : vector<8x32xf32>
    %c0_33 = arith.constant 0 : index
    %c0_34 = arith.constant 0 : index
    %56 = vector.load %arg8[%c0_33, %c0_34] : memref<1x32xf32, #tpu.memory_space<vmem>>, vector<1x32xf32>
    %c0_35 = arith.constant 0 : index
    %c0_36 = arith.constant 0 : index
    %57 = vector.load %arg9[%c0_35, %c0_36] : memref<1x32xf32, #tpu.memory_space<vmem>>, vector<1x32xf32>
    %58 = arith.addf %7, %55 : vector<8x32xf32>
    %cst_37 = arith.constant dense<0.000000e+00> : vector<8xf32>
    %59 = vector.multi_reduction <add>, %58, %cst_37 [1] : vector<8x32xf32> to vector<8xf32>
    %60 = vector.shape_cast %59 : vector<8xf32> to vector<8x1xf32>
    %cst_38 = arith.constant 3.200000e+01 : f32
    %61 = vector.broadcast %cst_38 : f32 to vector<8x1xf32>
    %62 = arith.divf %60, %61 : vector<8x1xf32>
    %63 = vector.broadcast %62 : vector<8x1xf32> to vector<8x32xf32>
    %64 = arith.subf %58, %63 : vector<8x32xf32>
    %65 = arith.mulf %64, %64 : vector<8x32xf32>
    %cst_39 = arith.constant dense<0.000000e+00> : vector<8xf32>
    %66 = vector.multi_reduction <add>, %65, %cst_39 [1] : vector<8x32xf32> to vector<8xf32>
    %67 = vector.shape_cast %66 : vector<8xf32> to vector<8x1xf32>
    %cst_40 = arith.constant 3.200000e+01 : f32
    %68 = vector.broadcast %cst_40 : f32 to vector<8x1xf32>
    %69 = arith.divf %67, %68 : vector<8x1xf32>
    %70 = vector.broadcast %62 : vector<8x1xf32> to vector<8x32xf32>
    %71 = arith.subf %58, %70 : vector<8x32xf32>
    %cst_41 = arith.constant 9.99999974E-6 : f32
    %72 = vector.broadcast %cst_41 : f32 to vector<8x1xf32>
    %73 = arith.addf %69, %72 : vector<8x1xf32>
    %74 = math.rsqrt %73 : vector<8x1xf32>
    %75 = vector.broadcast %74 : vector<8x1xf32> to vector<8x32xf32>
    %76 = arith.mulf %71, %75 : vector<8x32xf32>
    %77 = vector.broadcast %56 : vector<1x32xf32> to vector<8x32xf32>
    %78 = arith.mulf %76, %77 : vector<8x32xf32>
    %79 = vector.broadcast %57 : vector<1x32xf32> to vector<8x32xf32>
    %80 = arith.addf %78, %79 : vector<8x32xf32>
    %81 = arith.truncf %80 : vector<8x32xf32> to vector<8x32xbf16>
    %c0_42 = arith.constant 0 : index
    %c0_43 = arith.constant 0 : index
    %82 = vector.load %arg10[%c0_42, %c0_43] : memref<32x64xbf16, #tpu.memory_space<vmem>>, vector<32x64xbf16>
    %cst_44 = arith.constant dense<0.000000e+00> : vector<8x64xf32>
    %83 = tpu.matmul %81, %82, %cst_44 {dimension_numbers = #tpu.dot_dimension_numbers<[1], [0], [0], [1], [0, 0, 1, 1], [], []>} : vector<8x32xbf16>, vector<32x64xbf16>, vector<8x64xf32> -> vector<8x64xf32>
    %c0_45 = arith.constant 0 : index
    %c0_46 = arith.constant 0 : index
    %84 = vector.load %arg11[%c0_45, %c0_46] : memref<1x64xf32, #tpu.memory_space<vmem>>, vector<1x64xf32>
    %85 = vector.broadcast %84 : vector<1x64xf32> to vector<8x64xf32>
    %86 = arith.addf %83, %85 : vector<8x64xf32>
    %cst_47 = arith.constant 0.000000e+00 : f32
    %87 = vector.broadcast %cst_47 : f32 to vector<8x64xf32>
    %88 = arith.maximumf %86, %87 : vector<8x64xf32>
    %89 = arith.truncf %88 : vector<8x64xf32> to vector<8x64xbf16>
    %c0_48 = arith.constant 0 : index
    %c0_49 = arith.constant 0 : index
    %90 = vector.load %arg12[%c0_48, %c0_49] : memref<64x32xbf16, #tpu.memory_space<vmem>>, vector<64x32xbf16>
    %cst_50 = arith.constant dense<0.000000e+00> : vector<8x32xf32>
    %91 = tpu.matmul %89, %90, %cst_50 {dimension_numbers = #tpu.dot_dimension_numbers<[1], [0], [0], [1], [0, 0, 1, 1], [], []>} : vector<8x64xbf16>, vector<64x32xbf16>, vector<8x32xf32> -> vector<8x32xf32>
    %c0_51 = arith.constant 0 : index
    %c0_52 = arith.constant 0 : index
    %92 = vector.load %arg13[%c0_51, %c0_52] : memref<1x32xf32, #tpu.memory_space<vmem>>, vector<1x32xf32>
    %93 = vector.broadcast %92 : vector<1x32xf32> to vector<8x32xf32>
    %94 = arith.addf %91, %93 : vector<8x32xf32>
    %95 = arith.addf %94, %80 : vector<8x32xf32>
    %c0_53 = arith.constant 0 : index
    %c0_54 = arith.constant 0 : index
    %96 = vector.load %arg14[%c0_53, %c0_54] : memref<1x32xf32, #tpu.memory_space<vmem>>, vector<1x32xf32>
    %c0_55 = arith.constant 0 : index
    %c0_56 = arith.constant 0 : index
    %97 = vector.load %arg15[%c0_55, %c0_56] : memref<1x32xf32, #tpu.memory_space<vmem>>, vector<1x32xf32>
    %cst_57 = arith.constant dense<0.000000e+00> : vector<8xf32>
    %98 = vector.multi_reduction <add>, %95, %cst_57 [1] : vector<8x32xf32> to vector<8xf32>
    %99 = vector.shape_cast %98 : vector<8xf32> to vector<8x1xf32>
    %cst_58 = arith.constant 3.200000e+01 : f32
    %100 = vector.broadcast %cst_58 : f32 to vector<8x1xf32>
    %101 = arith.divf %99, %100 : vector<8x1xf32>
    %102 = vector.broadcast %101 : vector<8x1xf32> to vector<8x32xf32>
    %103 = arith.subf %95, %102 : vector<8x32xf32>
    %104 = arith.mulf %103, %103 : vector<8x32xf32>
    %cst_59 = arith.constant dense<0.000000e+00> : vector<8xf32>
    %105 = vector.multi_reduction <add>, %104, %cst_59 [1] : vector<8x32xf32> to vector<8xf32>
    %106 = vector.shape_cast %105 : vector<8xf32> to vector<8x1xf32>
    %cst_60 = arith.constant 3.200000e+01 : f32
    %107 = vector.broadcast %cst_60 : f32 to vector<8x1xf32>
    %108 = arith.divf %106, %107 : vector<8x1xf32>
    %109 = vector.broadcast %101 : vector<8x1xf32> to vector<8x32xf32>
    %110 = arith.subf %95, %109 : vector<8x32xf32>
    %cst_61 = arith.constant 9.99999997E-7 : f32
    %111 = vector.broadcast %cst_61 : f32 to vector<8x1xf32>
    %112 = arith.addf %108, %111 : vector<8x1xf32>
    %113 = math.rsqrt %112 : vector<8x1xf32>
    %114 = vector.broadcast %113 : vector<8x1xf32> to vector<8x32xf32>
    %115 = arith.mulf %110, %114 : vector<8x32xf32>
    %116 = vector.broadcast %96 : vector<1x32xf32> to vector<8x32xf32>
    %117 = arith.mulf %115, %116 : vector<8x32xf32>
    %118 = vector.broadcast %97 : vector<1x32xf32> to vector<8x32xf32>
    %119 = arith.addf %117, %118 : vector<8x32xf32>
    %120 = arith.addf %80, %119 : vector<8x32xf32>
    %cst_62 = arith.constant dense<0.000000e+00> : vector<8xf32>
    %121 = vector.multi_reduction <add>, %120, %cst_62 [1] : vector<8x32xf32> to vector<8xf32>
    %122 = vector.shape_cast %121 : vector<8xf32> to vector<8x1xf32>
    %cst_63 = arith.constant 3.200000e+01 : f32
    %123 = vector.broadcast %cst_63 : f32 to vector<8x1xf32>
    %124 = arith.divf %122, %123 : vector<8x1xf32>
    %125 = vector.broadcast %124 : vector<8x1xf32> to vector<8x32xf32>
    %126 = arith.subf %120, %125 : vector<8x32xf32>
    %127 = arith.mulf %126, %126 : vector<8x32xf32>
    %cst_64 = arith.constant dense<0.000000e+00> : vector<8xf32>
    %128 = vector.multi_reduction <add>, %127, %cst_64 [1] : vector<8x32xf32> to vector<8xf32>
    %129 = vector.shape_cast %128 : vector<8xf32> to vector<8x1xf32>
    %cst_65 = arith.constant 3.200000e+01 : f32
    %130 = vector.broadcast %cst_65 : f32 to vector<8x1xf32>
    %131 = arith.divf %129, %130 : vector<8x1xf32>
    %132 = vector.broadcast %124 : vector<8x1xf32> to vector<8x32xf32>
    %133 = arith.subf %120, %132 : vector<8x32xf32>
    %cst_66 = arith.constant 9.99999974E-6 : f32
    %134 = vector.broadcast %cst_66 : f32 to vector<8x1xf32>
    %135 = arith.addf %131, %134 : vector<8x1xf32>
    %136 = math.rsqrt %135 : vector<8x1xf32>
    %137 = vector.broadcast %136 : vector<8x1xf32> to vector<8x32xf32>
    %138 = arith.mulf %133, %137 : vector<8x32xf32>
    %139 = vector.broadcast %56 : vector<1x32xf32> to vector<8x32xf32>
    %140 = arith.mulf %138, %139 : vector<8x32xf32>
    %141 = vector.broadcast %57 : vector<1x32xf32> to vector<8x32xf32>
    %142 = arith.addf %140, %141 : vector<8x32xf32>
    %c0_67 = arith.constant 0 : index
    %c0_68 = arith.constant 0 : index
    %c0_69 = arith.constant 0 : index
    %143 = vector.load %arg16[%c0_67, %c0_68, %c0_69] : memref<1x8x32xf32, #tpu.memory_space<vmem>>, vector<1x8x32xf32>
    %144 = vector.shape_cast %143 : vector<1x8x32xf32> to vector<8x32xf32>
    %145 = vector.shape_cast %142 : vector<8x32xf32> to vector<1x8x32xf32>
    tpu.vector_store %arg16[%c0_67, %c0_68, %c0_69], %145 {strides = array<i32>} : memref<1x8x32xf32, #tpu.memory_space<vmem>>, vector<1x8x32xf32>,
    return
  }
  func.func @transform_0(%arg0: i32, %arg1: i32) -> (i32, i32, i32) {
    %c0_i32 = arith.constant 0 : i32
    %c0_i32_0 = arith.constant 0 : i32
    %c0_i32_1 = arith.constant 0 : i32
    return %arg0, %c0_i32, %c0_i32_0 : i32, i32, i32
  }
  func.func @transform_1(%arg0: i32, %arg1: i32) -> (i32, i32, i32) {
    %c0_i32 = arith.constant 0 : i32
    %c0_i32_0 = arith.constant 0 : i32
    return %arg0, %arg1, %c0_i32 : i32, i32, i32
  }
  func.func @transform_2(%arg0: i32, %arg1: i32) -> (i32, i32) {
    %c0_i32 = arith.constant 0 : i32
    %c0_i32_0 = arith.constant 0 : i32
    %c0_i32_1 = arith.constant 0 : i32
    return %c0_i32, %c0_i32_0 : i32, i32
  }
  func.func @transform_3(%arg0: i32, %arg1: i32) -> (i32, i32) {
    %c0_i32 = arith.constant 0 : i32
    %c0_i32_0 = arith.constant 0 : i32
    %c0_i32_1 = arith.constant 0 : i32
    return %c0_i32, %c0_i32_0 : i32, i32
  }
  func.func @transform_4(%arg0: i32, %arg1: i32) -> (i32, i32) {
    %c0_i32 = arith.constant 0 : i32
    %c0_i32_0 = arith.constant 0 : i32
    %c0_i32_1 = arith.constant 0 : i32
    return %c0_i32, %c0_i32_0 : i32, i32
  }
  func.func @transform_5(%arg0: i32, %arg1: i32) -> (i32, i32) {
    %c0_i32 = arith.constant 0 : i32
    %c0_i32_0 = arith.constant 0 : i32
    %c0_i32_1 = arith.constant 0 : i32
    return %c0_i32, %c0_i32_0 : i32, i32
  }
  func.func @transform_6(%arg0: i32, %arg1: i32) -> (i32, i32) {
    %c0_i32 = arith.constant 0 : i32
    %c0_i32_0 = arith.constant 0 : i32
    %c0_i32_1 = arith.constant 0 : i32
    return %c0_i32, %c0_i32_0 : i32, i32
  }
  func.func @transform_7(%arg0: i32, %arg1: i32) -> (i32, i32) {
    %c0_i32 = arith.constant 0 : i32
    %c0_i32_0 = arith.constant 0 : i32
    %c0_i32_1 = arith.constant 0 : i32
    return %c0_i32, %c0_i32_0 : i32, i32
  }
  func.func @transform_8(%arg0: i32, %arg1: i32) -> (i32, i32) {
    %c0_i32 = arith.constant 0 : i32
    %c0_i32_0 = arith.constant 0 : i32
    %c0_i32_1 = arith.constant 0 : i32
    return %c0_i32, %c0_i32_0 : i32, i32
  }
  func.func @transform_9(%arg0: i32, %arg1: i32) -> (i32, i32) {
    %c0_i32 = arith.constant 0 : i32
    %c0_i32_0 = arith.constant 0 : i32
    %c0_i32_1 = arith.constant 0 : i32
    return %c0_i32, %c0_i32_0 : i32, i32
  }
  func.func @transform_10(%arg0: i32, %arg1: i32) -> (i32, i32) {
    %c0_i32 = arith.constant 0 : i32
    %c0_i32_0 = arith.constant 0 : i32
    %c0_i32_1 = arith.constant 0 : i32
    return %c0_i32, %c0_i32_0 : i32, i32
  }
  func.func @transform_11(%arg0: i32, %arg1: i32) -> (i32, i32) {
    %c0_i32 = arith.constant 0 : i32
    %c0_i32_0 = arith.constant 0 : i32
    %c0_i32_1 = arith.constant 0 : i32
    return %c0_i32, %c0_i32_0 : i32, i32
  }
  func.func @transform_12(%arg0: i32, %arg1: i32) -> (i32, i32) {
    %c0_i32 = arith.constant 0 : i32
    %c0_i32_0 = arith.constant 0 : i32
    %c0_i32_1 = arith.constant 0 : i32
    return %c0_i32, %c0_i32_0 : i32, i32
  }
  func.func @transform_13(%arg0: i32, %arg1: i32) -> (i32, i32) {
    %c0_i32 = arith.constant 0 : i32
    %c0_i32_0 = arith.constant 0 : i32
    %c0_i32_1 = arith.constant 0 : i32
    return %c0_i32, %c0_i32_0 : i32, i32
  }
  func.func @transform_14(%arg0: i32, %arg1: i32) -> (i32, i32, i32) {
    %c0_i32 = arith.constant 0 : i32
    %c0_i32_0 = arith.constant 0 : i32
    return %arg0, %arg1, %c0_i32 : i32, i32, i32
  }
  func.func @transform_15(%arg0: i32, %arg1: i32) -> (i32, i32, i32, i32) {
    %c0_i32 = arith.constant 0 : i32
    %c0_i32_0 = arith.constant 0 : i32
    %c0_i32_1 = arith.constant 0 : i32
    return %arg0, %c0_i32, %arg1, %c0_i32_0 : i32, i32, i32, i32
  }
}

</mosaic_0001>

<bundles_post_ra>
// kernel: encoder_layer.1
= control target key start
LH: loop header
LB: loop body
LE: loop exit
PB: predicated region body
PF: predicated region fallthrough
CT: control target
= control target key end

     0   :  { %s2238_s0 = inlined_call_operand.vmem [shape: f32[2,16,32], index: 0, kind: input, shape index: {}]   ;;  %s2239_s1 = inlined_call_operand.vmem [shape: f32[2,16,16], index: 1, kind: input, shape index: {}]   ;;  %s2240_s2 = inlined_call_operand.vmem [shape: bf16[32,96], index: 2, kind: input, shape index: {}]   ;;  %s2241_s3 = inlined_call_operand.vmem [shape: f32[1,96], index: 3, kind: input, shape index: {}]   ;;  %s2242_s4 = inlined_call_operand.vmem [shape: bf16[32,32], index: 4, kind: input, shape index: {}]   ;;  %s2243_s5 = inlined_call_operand.vmem [shape: f32[1,32], index: 5, kind: input, shape index: {}]   ;;  %s2244_s6 = inlined_call_operand.vmem [shape: f32[1,32], index: 6, kind: input, shape index: {}]   ;;  %s2245_s7 = inlined_call_operand.vmem [shape: f32[1,32], index: 7, kind: input, shape index: {}]   ;;  %s2246_s8 = inlined_call_operand.vmem [shape: bf16[32,64], index: 8, kind: input, shape index: {}]   ;;  %s2247_s9 = inlined_call_operand.vmem [shape: f32[1,64], index: 9, kind: input, shape index: {}]   ;;  %s2248_s10 = inlined_call_operand.vmem [shape: bf16[64,32], index: 10, kind: input, shape index: {}]   ;;  %s2249_s11 = inlined_call_operand.vmem [shape: f32[1,32], index: 11, kind: input, shape index: {}]   ;;  %s2250_s12 = inlined_call_operand.vmem [shape: f32[1,32], index: 12, kind: input, shape index: {}]   ;;  %s2251_s13 = inlined_call_operand.vmem [shape: f32[1,32], index: 13, kind: input, shape index: {}]   ;;  %s2252_s14 = inlined_call_operand.hbm [shape: f32[2,16,32], index: 14, kind: output, shape index: {0}]   ;;  %s2253_s15 = inlined_call_operand.hbm [shape: f32[2,4,16,16], index: 15, kind: output, shape index: {1}]  }
   0x1   :  { %2273 = sst [smem:[#allocation25_spill]] %s2238_s0 }
   0x2   :  { %2274 = sst [smem:[#allocation26_spill]] %s2239_s1 }
   0x3   :  { %2275 = sst [smem:[#allocation27_spill]] %s2240_s2 }
   0x4   :  { %2276 = sst [smem:[#allocation28_spill]] %s2241_s3 }
   0x5   :  { %2277 = sst [smem:[#allocation29_spill]] %s2251_s13 }
   0x6   :  { %2278 = sst [smem:[#allocation30_spill]] %s2252_s14 }
   0x7   :  { %2279 = sst [smem:[#allocation31_spill]] %s2253_s15 }
   0x8   :  { %21 = vsyncpa [#allocation7], 0 }
   0x9   :  { %23 = vsyncpa [#allocation7 + $0x1], 0 }
   0xa   :  { %24 = vsyncpa [#allocation9], 0 }
   0xb   :  { %26 = vsyncpa [#allocation9 + $0x1], 0  ;;  %s1925_s18 = smov 0   ;;  %s1927_s19 = smov 0  }
   0xc   :  { %s1929_s20 = smov 0   ;;  %s1931_s21 = smov 0  }
   0xd   :  { %s1933_s22 = smov 0   ;;  %s1935_s23 = smov 0  }
   0xe   :  { %s1937_s24 = smov 0   ;;  %s1939_s25 = smov 0  }
   0xf LB: > { %2280 = sst [smem:[#allocation12_spill]] %s1798_s18  ;;  %s1450_s26 = sadd.s32 4294967295, %s1826_s25   ;;  %s1826_s25 = sphi %s1939_s25, %s32_s25   ;;  %s1822_s24 = sphi %s1937_s24, %s2317_s24   ;;  %s1818_s23 = sphi %s1935_s23, %s2316_s23   ;;  %s1814_s22 = sphi %s1933_s22, %s2315_s22   ;;  %s1810_s21 = sphi %s1931_s21, %s2314_s21   ;;  %s1806_s20 = sphi %s1929_s20, %s2313_s20   ;;  %s1802_s19 = sphi %s1927_s19, %s2312_s19   ;;  %s1798_s18 = sphi %s1925_s18, %s2311_s18  }
  0x10   : > { %2281 = sst [smem:[#allocation13_spill]] %s1802_s19  ;;  %s1451_s27 = sadd.s32 4294967294, %s1826_s25  }
  0x11   : > { %2282 = sst [smem:[#allocation14_spill]] %s1806_s20  ;;  %s41_s28 = sadd.s32 1, %s1818_s23 }
  0x12   : > { %2283 = sst [smem:[#allocation15_spill]] %s1814_s22  ;;  %p42_p0 = scmp.ge.s32.totalorder %s41_s28, 2 }
  0x13   : > { %2284 = sst [smem:[#allocation16_spill]] %s1818_s23  ;;  %s44_s29 = sadd.s32 1, %s1822_s24 }
  0x14   : > { %2285 = sst [smem:[#allocation17_spill]] %s1822_s24  ;;  %p369_p1 = scmp.ne.s32.totalorder %s1806_s20, %s1802_s19 }
  0x15   : > { %2286 = sst [smem:[#allocation18_spill]] %s1826_s25  ;;  %p370_p2 = scmp.eq.s32.totalorder %s1450_s26, 3 }
  0x16   : > { %s2319_s28 = smov (%p42_p0, %s41_s28), 0  ;;  %s2321_s29 = smov (!%p42_p0, %s44_s29), %s1822_s24 }
  0x17   : > { %2287 = sst [smem:[#allocation19_spill]] %s2319_s28  ;;  %s355_s30 = ssub.s32 %s1818_s23, %s2319_s28 }
  0x18   : > { %p1976_p3 = por %p370_p2, %p369_p1  ;;  %p46_p4 = scmp.ge.s32.totalorder %s2321_s29, 2 }
  0x19   : > { %p375_p5 = scmp.ne.s32.totalorder %s1802_s19, %s1798_s18  ;;  %p376_p6 = scmp.eq.s32.totalorder %s1451_s27, 3 }
  0x1a   : > { %s2288_s16 = scalar_select %p1976_p3, 1, 0 }
  0x1b   : > { %p1454_p7 = scmp.ge.s32.totalorder %s1826_s25, 1  ;;  %s2323_s29 = smov (%p46_p4, %s2321_s29), 0 }
  0x1c   : > { %2289 = sst [smem:[#allocation20_spill]] %s2288_s16  ;;  %p1985_p8 = por %p376_p6, %p375_p5 }
  0x1d   : > { %2290 = sst [smem:[#allocation21_spill]] %s2323_s29  ;;  %p477_p9 = scmp.lt.s32.totalorder %s1826_s25, 5 }
  0x1e   : > { %s2291_s17 = scalar_select %p1985_p8, 1, 0 }
  0x1f   : > { %s354_s26 = ssub.s32 %s1822_s24, %s2323_s29  ;;  %s359_s14 = sadd.s32 1, %s1806_s20 }
  0x20   : > { %2292 = sst [smem:[#allocation22_spill]] %s2291_s17  ;;  %s356_s15 = sor.u32 %s355_s30, %s354_s26 }
  0x21   : > { %p478_p10 = pnand %p1454_p7, %p477_p9  ;;  %p357_p11 = scmp.eq.s32.totalorder %s356_s15, 0 }
  0x23   : > { %s1994_s28 = scalar_select %p357_p11, %s1806_s20, %s359_s14  }
  0x24   : > { %481 = sbr.rel (%p478_p10) target bundleno = 2252 (0x8cc), region = 76 }
  0x25   : > { %2293 = sst [smem:[#allocation23_spill]] %s1994_s28 }
  0x29   : > { %s1997_s27 = sand.u32 1, %s1802_s19   ;;  %p538_p12 = scmp.lt.s32.totalorder %s1814_s22, 1 }
  0x2a   : > { %2294 = sst [smem:[#allocation24_spill]] %s1997_s27  ;;  %s1455_s23 = sshll.u32 %s1997_s27, 3 }
  0x2b   : > { %s1456_s17 = sshll.u32 %s1997_s27, 5  ;;  %p545_p13 = scmp.lt.s32.totalorder %s1810_s21, 1 }
  0x2c   : > { %s539_s29 = scalar_select %p538_p12, %s1814_s22, 1 }
  0x2d   : > { %s2295_s0 = sld [smem:[#allocation25_spill]]  ;;  %s2015_s13 = scalar_lea.vmem [#allocation6], %s1455_s23 }
  0x2e   : > { %s1556_s30 = sshll.u32 %s539_s29, 4  ;;  %s1459_s24 = sshll.u32 %s539_s29, 1 }
  0x2f   : > { %s546_s28 = scalar_select %p545_p13, %s1810_s21, 1 }
  0x30   : > { %s2296_s1 = sld [smem:[#allocation26_spill]]  ;;  %s2017_s27 = scalar_lea.vmem [#allocation8], %s1456_s17 }
  0x31   : > { %s548_s20 = sadd.s32 %s1459_s24, %s546_s28  ;;  %p1461_p0 = scmp.ne.s32.totalorder %s1810_s21, 0 }
  0x32   : > { %s1460_s18 = sshll.u32 %s548_s20, 3  ;;  %s2297_s2 = sld [smem:[#allocation27_spill]] (!%p1461_p0) }
  0x33   : > { %s2007_s14 = scalar_lea.vmem %s2295_s0, %s1556_s30  ;;  %555 = sbr.rel (%p1461_p0) target bundleno = 367 (0x16f), region = 80 }
  0x34   : > { %s2298_s3 = sld [smem:[#allocation28_spill]] (!%p1461_p0)  ;;  %s1828_s22 = smov (!%p1461_p0), 120  }
  0x35   : > { %s1829_s23 = smov (!%p1461_p0), 64   ;;  %s1830_s25 = smov (!%p1461_p0), 96  }
  0x36   : > { %s2013_s16 = scalar_lea.vmem %s2296_s1, %s1460_s18  ;;  %s1831_s28 = smov (!%p1461_p0), 56  }
  0x37   : > { %s1832_s29 = smov (!%p1461_p0), 112   ;;  %s1833_s17 = smov (!%p1461_p0), 88  }
  0x38   : > { %v1558_v0 = vld [vmem:[%s2297_s2 + $0x8] sm:$0xff]  ;;  %v1557_v1 = vld [vmem:[%s2297_s2] sm:$0xff]  ;;  %vm579_vm0 = vcmask 261120   ;;  %vm599_vm1 = vcmask 60416   ;;  %s1834_s30 = smov 48   ;;  %s1835_s15 = smov 104  }
  0x39   : > { %589 = vmatpush.bf16.msra.mxu0 %v1558_v0  ;;  %v556_v2 = vld [vmem:[%s2007_s14] sm:$0xff]  ;;  %v557_v3 = vld [vmem:[%s2007_s14 + $0x8] sm:$0xff]  ;;  %s1836_s26 = smov 80   ;;  %s1837_s20 = smov 72  }
  0x3a   : > { %v558_v4 = vpack.c.bf16 %v557_v3, %v556_v2  ;;  %v1668_v5 = vld [vmem:[%s2298_s3] ss:$0 sm:$0xff]  ;;  %s1838_s24 = smov 40  }
  0x3d   : > { %590 = vmatpush.bf16.msra.mxu0 %v1557_v1 }
  0x40   : > { %1470 = vmatmul.msk.bf16.vlgmr.msra.gmra.mxu0 %vm579_vm0, %v558_v4 }
  0xbd   : > { %v592_v6 = vpop.f32.mrf.mxu0 }
  0xbe   : > { %v593_v7 = vadd.f32 %v1668_v5, %v592_v6 }
  0xc0   : > { %v597_v8 = vpack.c.bf16 %v593_v7, %v593_v7 }
  0xc2   : > { %600 = vst.msk [vmem:[#allocation2] sm:$0xf] %vm599_vm1, %v597_v8  ;;  %620 = vrot.lane.b32.xlu2 %v597_v8, %s1828_s22  ;;  %612 = vrot.lane.b32.xlu1 %v597_v8, %s1829_s23 }
  0xc3   : > { %604 = vrot.lane.b32.xlu0 %v597_v8, %s1830_s25 }
  0xc5   : > { %v594_v9 = vpop.f32.mrf.mxu0 }
  0xc6   : > { %v595_v10 = vadd.f32 %v1668_v5, %v594_v9 }
  0xc8   : > { %v598_v11 = vpack.c.bf16 %v595_v10, %v595_v10 }
  0xca   : > { %601 = vst.msk [vmem:[#allocation2 + $0x4] sm:$0xf] %vm599_vm1, %v598_v11  ;;  %638 = vrot.lane.b32.xlu2 %v597_v8, %s1831_s28  ;;  %647 = vrot.lane.b32.xlu1 %v597_v8, %s1832_s29 }
  0xcb   : > { %629 = vrot.lane.b32.xlu0 %v597_v8, %s1833_s17 }
  0xd2   : > { %665 = vrot.lane.b32.xlu2 %v597_v8, %s1834_s30  ;;  %674 = vrot.lane.b32.xlu1 %v597_v8, %s1835_s15 }
  0xd3   : > { %656 = vrot.lane.b32.xlu0 %v597_v8, %s1836_s26 }
  0xda   : > { %622 = vrot.lane.b32.xlu2 %v598_v11, %s1828_s22  ;;  %614 = vrot.lane.b32.xlu1 %v598_v11, %s1829_s23 }
  0xdb   : > { %683 = vrot.lane.b32.xlu0 %v597_v8, %s1837_s20 }
  0xe2   : > { %649 = vrot.lane.b32.xlu2 %v598_v11, %s1832_s29  ;;  %631 = vrot.lane.b32.xlu1 %v598_v11, %s1833_s17 }
  0xe3   : > { %606 = vrot.lane.b32.xlu0 %v598_v11, %s1830_s25 }
  0xea   : > { %676 = vrot.lane.b32.xlu2 %v598_v11, %s1835_s15  ;;  %658 = vrot.lane.b32.xlu1 %v598_v11, %s1836_s26 }
  0xeb   : > { %640 = vrot.lane.b32.xlu0 %v598_v11, %s1831_s28 }
  0xf2   : > { %692 = vrot.lane.b32.xlu2 %v597_v8, %s1838_s24  ;;  %685 = vrot.lane.b32.xlu1 %v598_v11, %s1837_s20 }
  0xf3   : > { %667 = vrot.lane.b32.xlu0 %v598_v11, %s1834_s30 }
  0xfb   : > { %694 = vrot.lane.b32.xlu0 %v598_v11, %s1838_s24 }
 0x11c   : > { %v621_v12 = vpop.permute.xlu2 %620 }
 0x11d   : > { %627 = vst.msk [vmem:[#allocation2 + $0x8] sm:$0xf] %vm599_vm1, %v621_v12 }
 0x124   : > { %v639_v13 = vpop.permute.xlu2 %638 }
 0x125   : > { %645 = vst.msk [vmem:[#allocation4 + $0x8] sm:$0xf] %vm599_vm1, %v639_v13 }
 0x12c   : > { %v666_v14 = vpop.permute.xlu2 %665 }
 0x12d   : > { %672 = vst.msk [vmem:[#allocation4 + $0x10] sm:$0xf] %vm599_vm1, %v666_v14 }
 0x134   : > { %v623_v15 = vpop.permute.xlu2 %622  ;;  %v613_v16 = vpop.permute.xlu1 %612 }
 0x135   : > { %628 = vst.msk [vmem:[#allocation2 + $0xc] sm:$0xf] %vm599_vm1, %v623_v15  ;;  %v605_v17 = vpop.permute.xlu0 %604 }
 0x136   : > { %618 = vst.msk [vmem:[#allocation4] sm:$0xf] %vm599_vm1, %v613_v16 }
 0x137   : > { %610 = vst.msk [vmem:[#allocation3] sm:$0xf] %vm599_vm1, %v605_v17 }
 0x13c   : > { %v650_v18 = vpop.permute.xlu2 %649  ;;  %v648_v19 = vpop.permute.xlu1 %647 }
 0x13d   : > { %655 = vst.msk [vmem:[#allocation2 + $0x14] sm:$0xf] %vm599_vm1, %v650_v18  ;;  %v630_v20 = vpop.permute.xlu0 %629 }
 0x13e   : > { %654 = vst.msk [vmem:[#allocation2 + $0x10] sm:$0xf] %vm599_vm1, %v648_v19 }
 0x13f   : > { %636 = vst.msk [vmem:[#allocation3 + $0x8] sm:$0xf] %vm599_vm1, %v630_v20 }
 0x144   : > { %v677_v21 = vpop.permute.xlu2 %676  ;;  %v675_v22 = vpop.permute.xlu1 %674 }
 0x145   : > { %682 = vst.msk [vmem:[#allocation2 + $0x1c] sm:$0xf] %vm599_vm1, %v677_v21  ;;  %v657_v23 = vpop.permute.xlu0 %656 }
 0x146   : > { %681 = vst.msk [vmem:[#allocation2 + $0x18] sm:$0xf] %vm599_vm1, %v675_v22 }
 0x147   : > { %663 = vst.msk [vmem:[#allocation3 + $0x10] sm:$0xf] %vm599_vm1, %v657_v23 }
 0x14c   : > { %v693_v24 = vpop.permute.xlu2 %692  ;;  %v615_v25 = vpop.permute.xlu1 %614 }
 0x14d   : > { %699 = vst.msk [vmem:[#allocation4 + $0x18] sm:$0xf] %vm599_vm1, %v693_v24  ;;  %v684_v26 = vpop.permute.xlu0 %683 }
 0x14e   : > { %619 = vst.msk [vmem:[#allocation4 + $0x4] sm:$0xf] %vm599_vm1, %v615_v25 }
 0x14f   : > { %690 = vst.msk [vmem:[#allocation3 + $0x18] sm:$0xf] %vm599_vm1, %v684_v26 }
 0x154   : > { %v632_v27 = vpop.permute.xlu1 %631 }
 0x155   : > { %637 = vst.msk [vmem:[#allocation3 + $0xc] sm:$0xf] %vm599_vm1, %v632_v27  ;;  %v607_v28 = vpop.permute.xlu0 %606 }
 0x156   : > { %611 = vst.msk [vmem:[#allocation3 + $0x4] sm:$0xf] %vm599_vm1, %v607_v28 }
 0x15c   : > { %v659_v29 = vpop.permute.xlu1 %658 }
 0x15d   : > { %664 = vst.msk [vmem:[#allocation3 + $0x14] sm:$0xf] %vm599_vm1, %v659_v29  ;;  %v641_v30 = vpop.permute.xlu0 %640 }
 0x15e   : > { %646 = vst.msk [vmem:[#allocation4 + $0xc] sm:$0xf] %vm599_vm1, %v641_v30 }
 0x164   : > { %v686_v31 = vpop.permute.xlu1 %685 }
 0x165   : > { %691 = vst.msk [vmem:[#allocation3 + $0x1c] sm:$0xf] %vm599_vm1, %v686_v31  ;;  %v668_v32 = vpop.permute.xlu0 %667 }
 0x166   : > { %673 = vst.msk [vmem:[#allocation4 + $0x14] sm:$0xf] %vm599_vm1, %v668_v32 }
 0x16d   : > { %v695_v33 = vpop.permute.xlu0 %694 }
 0x16e   : > { %700 = vst.msk [vmem:[#allocation4 + $0x1c] sm:$0xf] %vm599_vm1, %v695_v33 }
 0x16f PF: > { %v1560_v34 = vld [vmem:[#allocation3 + $0x8] sm:$0xff]  ;;  %vm725_vm2 = vcmask 64512   ;;  %v1561_v35 = vld [vmem:[#allocation3 + $0x10] sm:$0xff]  ;;  %v1562_v36 = vld [vmem:[#allocation3 + $0x18] sm:$0xff]  ;;  %s1471_s18 = sshll.u32 %s1810_s21, 3  ;;  %vm826_vm3 = vcmask 130048  }
 0x170   : > { %s704_s19 = sshra.s32 %s1471_s18, 3  ;;  %v1559_v37 = vld [vmem:[#allocation3] sm:$0xff]  ;;  %v754_v38 = vsel %vm725_vm2, %v1560_v34, 0  ;;  %v778_v39 = vsel %vm725_vm2, %v1561_v35, 0  ;;  %v802_v40 = vsel %vm725_vm2, %v1562_v36, 0  ;;  %v1564_v23 = vld [vmem:[#allocation4 + $0x8] sm:$0xff]  ;;  %s702_s24 = scalar_lea.vmem %s2007_s14, %s1471_s18 }
 0x171   : > { %s1472_s22 = sshll.u32 %s704_s19, 2  ;;  %763 = vmatpush.bf16.xpose.msra.mxu1 %v754_v38  ;;  %787 = vmatpush.bf16.xpose.msra.mxu2 %v778_v39  ;;  %v730_v41 = vsel %vm725_vm2, %v1559_v37, 0  ;;  %v821_v47 = vld [vmem:[%s2013_s16] sm:$0xff]  ;;  %v1565_v24 = vld [vmem:[#allocation4 + $0x10] sm:$0xff]  ;;  %s2272_s16 = smov 8  }
 0x172   : > { %811 = vmatpush.bf16.xpose.msra.mxu3 %v802_v40  ;;  %739 = vmatpush.bf16.xpose.msra.mxu0 %v730_v41  ;;  %s707_s23 = scalar_lea.vmem [#allocation2], %s1472_s22  ;;  %v1563_v25 = vld [vmem:[#allocation4] sm:$0xff]  ;;  %s1840_s25 = smov 16  }
 0x173   : > { %v709_v42 = vld [vmem:[%s707_s23 + $0x8] sm:$0xf]  ;;  %v710_v43 = vld [vmem:[%s707_s23 + $0x10] sm:$0xf]  ;;  %v711_v44 = vld [vmem:[%s707_s23 + $0x18] sm:$0xf] }
 0x174   : > { %v708_v45 = vld [vmem:[%s707_s23] sm:$0xf]  ;;  %s1841_s28 = smov 24   ;;  %s2299_s17 = sld [smem:[#allocation15_spill]] }
 0x175   : > { %v1566_v26 = vld [vmem:[#allocation4 + $0x18] sm:$0xff]  ;;  %s2300_s26 = sld [smem:[#allocation29_spill]]  ;;  %s1315_s30 = sshll.u32 %s2017_s27, 4  ;;  %s1316_s30 = int_to_ptr.vmem [resolvable:$true] %s1315_s30 }
 0x176   : > { %s2301_s20 = sld [smem:[#allocation24_spill]] }
 0x178   : > { %1482 = vmatmul.msk.bf16.vlgmr.msra.gmra.mxu1 %vm725_vm2, %v709_v42  ;;  %1487 = vmatmul.msk.bf16.vlgmr.msra.gmra.mxu2 %vm725_vm2, %v710_v43 }
 0x179   : > { %1492 = vmatmul.msk.bf16.vlgmr.msra.gmra.mxu3 %vm725_vm2, %v711_v44  ;;  %1477 = vmatmul.msk.bf16.vlgmr.msra.gmra.mxu0 %vm725_vm2, %v708_v45 }
 0x17a   : > { %977 = vmatpush.bf16.msrb.mxu1 %v1564_v23  ;;  %999 = vmatpush.bf16.msrb.mxu2 %v1565_v24  ;;  %s1552_s14 = sshll.u32 %s2299_s17, 3 }
 0x17b   : > { %955 = vmatpush.bf16.msrb.mxu0 %v1563_v25  ;;  %1021 = vmatpush.bf16.msrb.mxu3 %v1566_v26  ;;  %s1312_s18 = sadd.s32 %s1810_s21, %s1552_s14 }
 0x17c   : > { %s1553_s19 = sshll.u32 %s1312_s18, 3 }
 0x1f5   : > { %v765_v46 = vpop.f32.mrf.mxu1 }
 0x1f6   : > { %v818_v48 = vmul.f32 0.35355338, %v765_v46  ;;  %v741_v49 = vpop.f32.mrf.mxu0 }
 0x1f7   : > { %v817_v51 = vmul.f32 0.35355338, %v741_v49 }
 0x1f8   : > { %v823_v50 = vadd.f32 %v821_v47, %v818_v48 }
 0x1f9   : > { %v822_v56 = vadd.f32 %v821_v47, %v817_v51 }
 0x1fa   : > { %v830_v52 = vsel %vm826_vm3, %v823_v50, -inf }
 0x1fb   : > { %v789_v53 = vpop.f32.mrf.mxu2  ;;  %831 = vmax.xlane.f32.xlu1 %v830_v52  ;;  %v827_v62 = vsel %vm826_vm3, %v822_v56, -inf }
 0x1fc   : > { %v819_v54 = vmul.f32 0.35355338, %v789_v53  ;;  %v813_v55 = vpop.f32.mrf.mxu3 }
 0x1fd   : > { %v767_v57 = vpop.f32.mrf.mxu1  ;;  %v820_v58 = vmul.f32 0.35355338, %v813_v55 }
 0x1fe   : > { %v824_v59 = vadd.f32 %v821_v47, %v819_v54  ;;  %v743_v60 = vpop.f32.mrf.mxu0 }
 0x1ff   : > { %v825_v63 = vadd.f32 %v821_v47, %v820_v58 }
 0x200   : > { %v833_v61 = vsel %vm826_vm3, %v824_v59, -inf }
 0x201   : > { %834 = vmax.xlane.f32.xlu0 %v833_v61  ;;  %v836_v2 = vsel %vm826_vm3, %v825_v63, -inf }
 0x203   : > { %v791_v0 = vpop.f32.mrf.mxu2  ;;  %828 = vmax.xlane.f32.xlu1 %v827_v62 }
 0x204   : > { %v815_v1 = vpop.f32.mrf.mxu3 }
 0x209   : > { %837 = vmax.xlane.f32.xlu0 %v836_v2 }
 0x26e   : > { %v832_v3 = vpop.xlane.xlu1 %831 }
 0x26f   : > { %v840_v4 = vsub.f32 %v823_v50, %v832_v3 }
 0x271   : > { %v845_v5 = vmul.f32 1.442695, %v840_v4 }
 0x273   : > { %1676 = vpow2.f32 %v845_v5 }
 0x274   : > { %v835_v6 = vpop.xlane.xlu0 %834 }
 0x275   : > { %v841_v7 = vsub.f32 %v824_v59, %v835_v6 }
 0x276   : > { %v829_v8 = vpop.xlane.xlu1 %828 }
 0x277   : > { %v847_v9 = vmul.f32 1.442695, %v841_v7  ;;  %v839_v10 = vsub.f32 %v822_v56, %v829_v8 }
 0x279   : > { %v1677_v11 = vpop.eup %1676  ;;  %1678 = vpow2.f32 %v847_v9  ;;  %v843_v12 = vmul.f32 1.442695, %v839_v10 }
 0x27a   : > { %v854_v13 = vsel %vm826_vm3, %v1677_v11, 0.0 }
 0x27b   : > { %1680 = vpow2.f32 %v843_v12  ;;  %855 = vadd.xlane.f32.xlu0 %v854_v13 }
 0x27c   : > { %v838_v14 = vpop.xlane.xlu0 %837 }
 0x27d   : > { %v842_v15 = vsub.f32 %v825_v63, %v838_v14 }
 0x27f   : > { %v2072_v16 = vpop.eup %1678  ;;  %v849_v17 = vmul.f32 1.442695, %v842_v15 }
 0x280   : > { %v857_v18 = vsel %vm826_vm3, %v2072_v16, 0.0 }
 0x281   : > { %v2076_v19 = vpop.eup %1680  ;;  %1682 = vpow2.f32 %v849_v17  ;;  %858 = vadd.xlane.f32.xlu2 %v857_v18 }
 0x282   : > { %v851_v20 = vsel %vm826_vm3, %v2076_v19, 0.0 }
 0x283   : > { %852 = vadd.xlane.f32.xlu1 %v851_v20 }
 0x287   : > { %v2080_v21 = vpop.eup %1682 }
 0x288   : > { %v860_v22 = vsel %vm826_vm3, %v2080_v21, 0.0 }
 0x289   : > { %861 = vadd.xlane.f32.xlu2 %v860_v22 }
 0x2ee   : > { %v856_v27 = vpop.xlane.xlu0 %855 }
 0x2ef   : > { %1684 = vrcp.f32 %v856_v27  ;;  %v889_v33 = vand.u32 2147483648, %v856_v27  ;;  %v887_v35 = vand.u32 2147483647, %v856_v27  ;;  %vm883_vm5 = vweird.f32 %v856_v27 }
 0x2f1   : > { %v890_v41 = vor.u32 1.1754944e-38, %v889_v33  ;;  %vm888_vm7 = vcmp.eq.f32.partialorder %v887_v35, 8.507059e+37  ;;  %v1669_v33 = vld [vmem:[%s2243_s5] ss:$0 sm:$0xff] }
 0x2f2   : > { %v703_v35 = vld [vmem:[%s702_s24] sm:$0xff] }
 0x2f4   : > { %v859_v28 = vpop.xlane.xlu2 %858 }
 0x2f5   : > { %v1685_v29 = vpop.eup %1684  ;;  %1686 = vrcp.f32 %v859_v28  ;;  %v902_v45 = vand.u32 2147483647, %v859_v28  ;;  %v904_v46 = vand.u32 2147483648, %v859_v28  ;;  %vm898_vm9 = vweird.f32 %v859_v28 }
 0x2f6   : > { %v879_v30 = vmul.f32 %v1685_v29, %v856_v27  ;;  %v853_v31 = vpop.xlane.xlu1 %852  ;;  %vm884_vm4 = vweird.f32 %v1685_v29 }
 0x2f7   : > { %1688 = vrcp.f32 %v853_v31  ;;  %vm885_vm6 = vmor %vm883_vm5, %vm884_vm4  ;;  %vm868_vm10 = vweird.f32 %v853_v31  ;;  %v872_v51 = vand.u32 2147483647, %v853_v31  ;;  %v874_v52 = vand.u32 2147483648, %v853_v31 }
 0x2f8   : > { %v880_v32 = vsub.f32 1.0, %v879_v30  ;;  %v905_v57 = vor.u32 1.1754944e-38, %v904_v46  ;;  %vm903_vm13 = vcmp.eq.f32.partialorder %v902_v45, 8.507059e+37  ;;  %vm1028_vm5 = vcmask 60416  }
 0x2f9   : > { %v875_v61 = vor.u32 1.1754944e-38, %v874_v52  ;;  %vm873_vm15 = vcmp.eq.f32.partialorder %v872_v51, 8.507059e+37  ;;  %v1570_v52 = vld [vmem:[%s2246_s8 + $0x8] sm:$0xff] }
 0x2fa   : > { %v881_v34 = vmul.f32 %v1685_v29, %v880_v32  ;;  %1159 = vmatpush.bf16.msra.mxu1 %v1570_v52 }
 0x2fb   : > { %v1687_v36 = vpop.eup %1686 }
 0x2fc   : > { %v882_v37 = vadd.f32 %v1685_v29, %v881_v34  ;;  %v894_v38 = vmul.f32 %v1687_v36, %v859_v28  ;;  %v862_v39 = vpop.xlane.xlu2 %861  ;;  %vm899_vm8 = vweird.f32 %v1687_v36  ;;  %v1568_v28 = vld [vmem:[%s2242_s4 + $0x8] sm:$0xff] }
 0x2fd   : > { %v1689_v40 = vpop.eup %1688  ;;  %1690 = vrcp.f32 %v862_v39  ;;  %vm900_vm12 = vmor %vm898_vm9, %vm899_vm8  ;;  %v917_v2 = vand.u32 2147483647, %v862_v39  ;;  %v919_v3 = vand.u32 2147483648, %v862_v39  ;;  %vm913_vm1 = vweird.f32 %v862_v39  ;;  %1082 = vmatpush.bf16.msra.mxu0 %v1568_v28 }
 0x2fe   : > { %v886_v42 = vsel %vm885_vm6, %v1685_v29, %v882_v37  ;;  %v895_v43 = vsub.f32 1.0, %v894_v38  ;;  %v864_v44 = vmul.f32 %v1689_v40, %v853_v31  ;;  %vm869_vm11 = vweird.f32 %v1689_v40  ;;  %v1567_v29 = vld [vmem:[%s2242_s4] sm:$0xff] }
 0x2ff   : > { %v891_v47 = vsel %vm888_vm7, %v890_v41, %v886_v42  ;;  %vm870_vm14 = vmor %vm868_vm10, %vm869_vm11  ;;  %v920_v10 = vor.u32 1.1754944e-38, %v919_v3  ;;  %vm918_vm4 = vcmp.eq.f32.partialorder %v917_v2, 8.507059e+37  ;;  %vm1042_vm6 = vcmask 191616   ;;  %v2138_v2 = vld [vmem:[%s2244_s6] ss:$0 sm:$0xff] }
 0x300   : > { %v896_v48 = vmul.f32 %v1687_v36, %v895_v43  ;;  %v865_v49 = vsub.f32 1.0, %v864_v44  ;;  %v892_v50 = vmul.f32 %v1677_v11, %v891_v47  ;;  %vm1049_vm7 = vcmask 257216  }
 0x301   : > { %1083 = vmatpush.bf16.msra.mxu0 %v1567_v29  ;;  %vm1072_vm8 = vcmask 261120  }
 0x302   : > { %v897_v53 = vadd.f32 %v1687_v36, %v896_v48  ;;  %v866_v54 = vmul.f32 %v1689_v40, %v865_v49  ;;  %924 = vst.msk [vmem:[%s2017_s27 + $0x8] sm:$0xff] %vm826_vm3, %v892_v50  ;;  %v928_v55 = vpack.c.bf16 %v892_v50, %v892_v50 }
 0x303   : > { %v1691_v56 = vpop.eup %1690 }
 0x304   : > { %v901_v58 = vsel %vm900_vm12, %v1687_v36, %v897_v53  ;;  %v867_v59 = vadd.f32 %v1689_v40, %v866_v54  ;;  %v909_v60 = vmul.f32 %v1691_v56, %v862_v39  ;;  %1502 = vmatmul.msk.bf16.vlgmr.msrb.gmra.mxu1 %vm826_vm3, %v928_v55  ;;  %vm914_vm0 = vweird.f32 %v1691_v56  ;;  %v1569_v53 = vld [vmem:[%s2246_s8] sm:$0xff]  ;;  %v1574_v54 = vld [vmem:[%s2248_s10 + $0x18] sm:$0xff] }
 0x305   : > { %v906_v62 = vsel %vm903_vm13, %v905_v57, %v901_v58  ;;  %vm915_vm2 = vmor %vm913_vm1, %vm914_vm0  ;;  %1160 = vmatpush.bf16.msra.mxu1 %v1569_v53  ;;  %1212 = vmatpush.bf16.msra.mxu2 %v1574_v54  ;;  %v1573_v57 = vld [vmem:[%s2248_s10 + $0x10] sm:$0xff]  ;;  %vm1204_vm13 = vcmask 523264  }
 0x306   : > { %v871_v63 = vsel %vm870_vm14, %v1689_v40, %v867_v59  ;;  %v910_v0 = vsub.f32 1.0, %v909_v60  ;;  %v907_v1 = vmul.f32 %v2072_v16, %v906_v62  ;;  %v1842_v40 = vmov 32.0   ;;  %v1572_v59 = vld [vmem:[%s2248_s10 + $0x8] sm:$0xff] }
 0x307   : > { %v876_v4 = vsel %vm873_vm15, %v875_v61, %v871_v63  ;;  %1692 = vrcp.f32 %v1842_v40 }
 0x308   : > { %v911_v5 = vmul.f32 %v1691_v56, %v910_v0  ;;  %925 = vst.msk [vmem:[%s2017_s27 + $0x10] sm:$0xff] %vm826_vm3, %v907_v1  ;;  %v929_v6 = vpack.c.bf16 %v907_v1, %v907_v1  ;;  %v877_v7 = vmul.f32 %v2076_v19, %v876_v4  ;;  %v2143_v4 = vld [vmem:[%s2245_s7] ss:$0 sm:$0xff] }
 0x309   : > { %1213 = vmatpush.bf16.msra.mxu2 %v1573_v57 }
 0x30a   : > { %v912_v8 = vadd.f32 %v1691_v56, %v911_v5  ;;  %1507 = vmatmul.msk.bf16.vlgmr.msrb.gmra.mxu2 %vm826_vm3, %v929_v6  ;;  %923 = vst.msk [vmem:[%s2017_s27] sm:$0xff] %vm826_vm3, %v877_v7  ;;  %v927_v9 = vpack.c.bf16 %v877_v7, %v877_v7 }
 0x30c   : > { %v916_v11 = vsel %vm915_vm2, %v1691_v56, %v912_v8  ;;  %1497 = vmatmul.msk.bf16.vlgmr.msrb.gmra.mxu0 %vm826_vm3, %v927_v9  ;;  %v1571_v9 = vld [vmem:[%s2248_s10] sm:$0xff] }
 0x30d   : > { %v921_v12 = vsel %vm918_vm4, %v920_v10, %v916_v11  ;;  %v1693_v41 = vpop.eup %1692  ;;  %1214 = vmatpush.bf16.msra.mxu2 %v1572_v59  ;;  %v1672_v10 = vld [vmem:[%s2247_s9] ss:$0 sm:$0xff] }
 0x30e   : > { %v922_v13 = vmul.f32 %v2080_v21, %v921_v12  ;;  %v1096_v42 = vmul.f32 32.0, %v1693_v41  ;;  %vm1100_vm9 = vweird.f32 %v1693_v41 }
 0x310   : > { %926 = vst.msk [vmem:[%s2017_s27 + $0x18] sm:$0xff] %vm826_vm3, %v922_v13  ;;  %v930_v14 = vpack.c.bf16 %v922_v13, %v922_v13  ;;  %v1097_v43 = vsub.f32 1.0, %v1096_v42 }
 0x311   : > { %1215 = vmatpush.bf16.msra.mxu2 %v1571_v9 }
 0x312   : > { %1512 = vmatmul.msk.bf16.vlgmr.msrb.gmra.mxu3 %vm826_vm3, %v930_v14  ;;  %vm1035_vm3 = vcmask 126016   ;;  %v1098_v44 = vmul.f32 %v1693_v41, %v1097_v43 }
 0x314   : > { %v1099_v45 = vadd.f32 %v1693_v41, %v1098_v44 }
 0x316   : > { %v2115_v46 = vsel %vm1100_vm9, %v1693_v41, %v1099_v45 }
 0x381   : > { %v979_v15 = vpop.f32.mrf.mxu1 }
 0x382   : > { %v1030_v16 = vpack.c.bf16 %v979_v15, %v979_v15 }
 0x384   : > { %1032 = vrot.lane.b32.xlu2 %v1030_v16, %s2272_s16  ;;  %v1673_v16 = vld [vmem:[%s2249_s11] ss:$0 sm:$0xff] }
 0x389   : > { %v957_v17 = vpop.f32.mrf.mxu0  ;;  %v981_v18 = vpop.f32.mrf.mxu1 }
 0x38a   : > { %v1027_v19 = vpack.c.bf16 %v957_v17, %v957_v17 }
 0x38c   : > { %1029 = vst.msk [vmem:[#allocation5] sm:$0xf] %vm1028_vm5, %v1027_v19 }
 0x38d   : > { %v1001_v20 = vpop.f32.mrf.mxu2 }
 0x38e   : > { %v1037_v22 = vpack.c.bf16 %v1001_v20, %v1001_v20 }
 0x390   : > { %1039 = vrot.lane.b32.xlu0 %v1037_v22, %s1840_s25  ;;  %s2303_s25 = sld [smem:[#allocation31_spill]] }
 0x391   : > { %v959_v21 = vpop.f32.mrf.mxu0 }
 0x395   : > { %v1003_v23 = vpop.f32.mrf.mxu2  ;;  %v1023_v24 = vpop.f32.mrf.mxu3 }
 0x396   : > { %v1044_v25 = vpack.c.bf16 %v1023_v24, %v1023_v24  ;;  %s1314_s29 = scalar_lea.hbm %s2303_s25, %s1553_s19 }
 0x397   : > { %s1317_s15 = sshll.u32 %s1314_s29, 4  ;;  %s1318_s15 = int_to_ptr.hbm [resolvable:$true] %s1317_s15 }
 0x398   : > { %1046 = vrot.lane.b32.xlu1 %v1044_v25, %s1841_s28  ;;  %s2304_s28 = smov %s2303_s25  ;;  %s1714_s16 = sshra.s32 %s1318_s15, 4  ;;  %s1715_s16 = int_to_ptr.hbm [resolvable:$true] %s1714_s16 }
 0x399   : > { %s1716_s0 = scalar_lea.hbm %s1715_s16, 32  ;;  %s1720_s14 = scalar_lea.hbm %s2304_s28, 128 }
 0x39a   : > { %p1717_p1 = scmp.ne.s32.totalorder %s1715_s16, %s1716_s0  ;;  %p1721_p5 = scmp.lt.s32.totalorder %s1715_s16, %s2304_s28 }
 0x39b   : > { %p1722_p6 = scmp.lt.s32.totalorder %s1720_s14, %s1716_s0 }
 0x39c   : > { %p1718_p2 = pnand %p1717_p1, %p1976_p3 }
 0x39d   : > { %v1025_v26 = vpop.f32.mrf.mxu3  ;;  %p1723_p7 = por %p1722_p6, %p1721_p5 }
 0x39e   : > { %p1719_p4 = pneg %p1718_p2 }
 0x3a0   : > { %p1724_p9 = pnand %p1723_p7, %p1719_p4 }
 0x3de   : > { %v1033_v27 = vpop.permute.xlu2 %1032 }
 0x3df   : > { %1036 = vst.msk [vmem:[#allocation5] sm:$0xf] %vm1035_vm3, %v1033_v27 }
 0x402   : > { %v1040_v30 = vpop.permute.xlu0 %1039 }
 0x403   : > { %1043 = vst.msk [vmem:[#allocation5] sm:$0xf] %vm1042_vm6, %v1040_v30 }
 0x40a   : > { %v1047_v31 = vpop.permute.xlu1 %1046 }
 0x40b   : > { %1050 = vst.msk [vmem:[#allocation5] sm:$0xf] %vm1049_vm7, %v1047_v31 }
 0x412   : > { %v1051_v32 = vld [vmem:[#allocation5] sm:$0xf] }
 0x413   : > { %1521 = vmatmul.msk.bf16.vlgmr.msra.gmra.mxu0 %vm1072_vm8, %v1051_v32 }
 0x490   : > { %v1085_v34 = vpop.f32.mrf.mxu0 }
 0x491   : > { %v1086_v36 = vadd.f32 %v1669_v33, %v1085_v34 }
 0x493   : > { %v1091_v37 = vadd.f32 %v1086_v36, %v703_v35  ;;  %v1674_v36 = vld [vmem:[%s2250_s12] ss:$0 sm:$0xff] }
 0x495   : > { %v1092_v38 = vsel %vm1072_vm8, %v1091_v37, 0.0 }
 0x496   : > { %1093 = vadd.xlane.f32.xlu2 %v1092_v38 }
 0x498   : > { %v1087_v39 = vpop.f32.mrf.mxu0 }
 0x499   : > { %v1675_v39 = vld [vmem:[%s2300_s26] ss:$0 sm:$0xff]  ;;  %s1286_s26 = scalar_lea.sflag [#allocation9], %s2301_s20 }
 0x509   : > { %v1094_v47 = vpop.xlane.xlu2 %1093 }
 0x50a   : > { %v1102_v48 = vmul.f32 %v2115_v46, %v1094_v47 }
 0x50c   : > { %v1103_v49 = vsub.f32 %v1091_v37, %v1102_v48 }
 0x50e   : > { %v1104_v50 = vmul.f32 %v1103_v49, %v1103_v49 }
 0x510   : > { %v1105_v51 = vsel %vm1072_vm8, %v1104_v50, 0.0 }
 0x511   : > { %1106 = vadd.xlane.f32.xlu0 %v1105_v51 }
 0x584   : > { %v1107_v55 = vpop.xlane.xlu0 %1106 }
 0x585   : > { %v1108_v56 = vmul.f32 %v1107_v55, %v2115_v46 }
 0x587   : > { %v1109_v58 = vadd.f32 1e-05, %v1108_v56 }
 0x589   : > { %1694 = vrsqrt.f32 %v1109_v58  ;;  %vm1116_vm11 = vweird.f32 %v1109_v58 }
 0x58f   : > { %v1695_v60 = vpop.eup %1694 }
 0x590   : > { %v1111_v61 = vmul.f32 %v1695_v60, %v1109_v58  ;;  %vm1117_vm10 = vweird.f32 %v1695_v60 }
 0x591   : > { %vm1118_vm12 = vmor %vm1116_vm11, %vm1117_vm10 }
 0x592   : > { %v1112_v62 = vmul.f32 %v1695_v60, %v1111_v61 }
 0x594   : > { %v1113_v63 = vmul.f32 0.5, %v1112_v62 }
 0x596   : > { %v1114_v0 = vsub.f32 1.5, %v1113_v63 }
 0x598   : > { %v1115_v1 = vmul.f32 %v1695_v60, %v1114_v0 }
 0x59a   : > { %v1119_v3 = vsel %vm1118_vm12, %v1695_v60, %v1115_v1 }
 0x59b   : > { %v1120_v5 = vmul.f32 %v1119_v3, %v1103_v49 }
 0x59d   : > { %v1124_v6 = vmul.f32 %v2138_v2, %v1120_v5 }
 0x59f   : > { %v1128_v7 = vadd.f32 %v2143_v4, %v1124_v6 }
 0x5a1   : > { %v1129_v8 = vpack.c.bf16 %v1128_v7, %v1128_v7 }
 0x5a3   : > { %1530 = vmatmul.msk.bf16.vlgmr.msra.gmra.mxu1 %vm1072_vm8, %v1129_v8 }
 0x620   : > { %v1162_v11 = vpop.f32.mrf.mxu1 }
 0x621   : > { %v1163_v12 = vadd.f32 %v1672_v10, %v1162_v11 }
 0x623   : > { %v1166_v13 = vmax.f32 %v1163_v12, 0.0 }
 0x625   : > { %v1167_v14 = vpack.c.bf16 %v1166_v13, %v1166_v13 }
 0x627   : > { %1547 = vmatmul.msk.bf16.vlgmr.msra.gmra.mxu2 %vm1204_vm13, %v1167_v14 }
 0x628   : > { %v1164_v15 = vpop.f32.mrf.mxu1 }
 0x6aa   : > { %v1217_v17 = vpop.f32.mrf.mxu2 }
 0x6ab   : > { %v1218_v18 = vadd.f32 %v1673_v16, %v1217_v17 }
 0x6ad   : > { %v1221_v19 = vadd.f32 %v1218_v18, %v1128_v7 }
 0x6af   : > { %v1224_v20 = vsel %vm1072_vm8, %v1221_v19, 0.0 }
 0x6b0   : > { %1225 = vadd.xlane.f32.xlu1 %v1224_v20 }
 0x6b2   : > { %v1219_v22 = vpop.f32.mrf.mxu2 }
 0x723   : > { %v1226_v21 = vpop.xlane.xlu1 %1225 }
 0x724   : > { %v1227_v23 = vmul.f32 %v1226_v21, %v2115_v46 }
 0x726   : > { %v1228_v24 = vsub.f32 %v1221_v19, %v1227_v23 }
 0x728   : > { %v1229_v25 = vmul.f32 %v1228_v24, %v1228_v24 }
 0x72a   : > { %v1230_v26 = vsel %vm1072_vm8, %v1229_v25, 0.0 }
 0x72b   : > { %1231 = vadd.xlane.f32.xlu2 %v1230_v26 }
 0x79e   : > { %v1232_v27 = vpop.xlane.xlu2 %1231 }
 0x79f   : > { %v1233_v28 = vmul.f32 %v1232_v27, %v2115_v46 }
 0x7a1   : > { %v1234_v29 = vadd.f32 1e-06, %v1233_v28 }
 0x7a3   : > { %1696 = vrsqrt.f32 %v1234_v29  ;;  %vm1241_vm15 = vweird.f32 %v1234_v29 }
 0x7a9   : > { %v1697_v30 = vpop.eup %1696 }
 0x7aa   : > { %v1236_v31 = vmul.f32 %v1697_v30, %v1234_v29  ;;  %vm1242_vm14 = vweird.f32 %v1697_v30 }
 0x7ab   : > { %vm1243_vm0 = vmor %vm1241_vm15, %vm1242_vm14 }
 0x7ac   : > { %v1237_v32 = vmul.f32 %v1697_v30, %v1236_v31 }
 0x7ae   : > { %v1238_v33 = vmul.f32 0.5, %v1237_v32 }
 0x7b0   : > { %v1239_v34 = vsub.f32 1.5, %v1238_v33 }
 0x7b2   : > { %v1240_v35 = vmul.f32 %v1697_v30, %v1239_v34 }
 0x7b4   : > { %v1244_v37 = vsel %vm1243_vm0, %v1697_v30, %v1240_v35 }
 0x7b5   : > { %v1245_v38 = vmul.f32 %v1244_v37, %v1228_v24 }
 0x7b7   : > { %v1249_v40 = vmul.f32 %v1674_v36, %v1245_v38 }
 0x7b9   : > { %v1253_v41 = vadd.f32 %v1675_v39, %v1249_v40 }
 0x7bb   : > { %v1254_v42 = vadd.f32 %v1253_v41, %v1128_v7 }
 0x7bd   : > { %v1255_v43 = vsel %vm1072_vm8, %v1254_v42, 0.0 }
 0x7be   : > { %1256 = vadd.xlane.f32.xlu0 %v1255_v43 }
 0x831   : > { %v1257_v44 = vpop.xlane.xlu0 %1256 }
 0x832   : > { %v1258_v45 = vmul.f32 %v1257_v44, %v2115_v46 }
 0x834   : > { %v1259_v47 = vsub.f32 %v1254_v42, %v1258_v45 }
 0x836   : > { %v1260_v48 = vmul.f32 %v1259_v47, %v1259_v47 }
 0x838   : > { %v1261_v49 = vsel %vm1072_vm8, %v1260_v48, 0.0 }
 0x839   : > { %1262 = vadd.xlane.f32.xlu2 %v1261_v49 }
 0x83a   : > { %1727 = shalt.err (!%p1724_p9)
}
 0x83b   : > { %s1843_s27 = smov 128   ;;  %s1844_s19 = smov 256  }
 0x83c   : > { %s2305_s22 = smov 8   ;;  %s1550_s0 = sshll.u32 %s2299_s17, 1 }
 0x83d   : > { %1576 = dma.vmem_to_hbm [thread:$0]  (%p1976_p3), %s1316_s30, 512, %s1318_s15, %s1286_s26, %s1843_s27, %s1844_s19, %s2305_s22  }
 0x83e   : > { %s1296_s1 = sadd.s32 %s1810_s21, %s1550_s0  ;;  %s2306_s23 = sld [smem:[#allocation30_spill]] }
 0x83f   : > { %s1551_s2 = sshll.u32 %s1296_s1, 3  ;;  %s1300_s30 = sshll.u32 %s2015_s13, 4  ;;  %s1301_s30 = int_to_ptr.vmem [resolvable:$true] %s1300_s30 }
 0x840   : > { %s1281_s21 = scalar_lea.sflag [#allocation7], %s2301_s20 }
 0x844   : > { %s2307_s29 = smov %s2306_s23  ;;  %s1298_s25 = scalar_lea.hbm %s2306_s23, %s1551_s2 }
 0x845   : > { %s1302_s17 = sshll.u32 %s1298_s25, 4  ;;  %s1748_s27 = scalar_lea.hbm %s2307_s29, 32  ;;  %s1303_s17 = int_to_ptr.hbm [resolvable:$true] %s1302_s17 }
 0x846   : > { %s1742_s15 = sshra.s32 %s1303_s17, 4  ;;  %s1743_s15 = int_to_ptr.hbm [resolvable:$true] %s1742_s15 }
 0x847   : > { %s1744_s26 = scalar_lea.hbm %s1743_s15, 8  ;;  %p1749_p13 = scmp.lt.s32.totalorder %s1743_s15, %s2307_s29 }
 0x848   : > { %p1745_p10 = scmp.ne.s32.totalorder %s1743_s15, %s1744_s26  ;;  %p1750_p0 = scmp.lt.s32.totalorder %s1748_s27, %s1744_s26 }
 0x84a   : > { %p1746_p11 = pnand %p1745_p10, %p1976_p3  ;;  %p1751_p1 = por %p1750_p0, %p1749_p13 }
 0x84c   : > { %p1747_p12 = pneg %p1746_p11 }
 0x84e   : > { %p1752_p2 = pnand %p1751_p1, %p1747_p12 }
 0x8ac   : > { %v1263_v50 = vpop.xlane.xlu2 %1262 }
 0x8ad   : > { %v1264_v51 = vmul.f32 %v1263_v50, %v2115_v46 }
 0x8af   : > { %v1265_v52 = vadd.f32 1e-05, %v1264_v51 }
 0x8b1   : > { %1698 = vrsqrt.f32 %v1265_v52  ;;  %vm1272_vm2 = vweird.f32 %v1265_v52 }
 0x8b7   : > { %v1699_v53 = vpop.eup %1698 }
 0x8b8   : > { %v1267_v54 = vmul.f32 %v1699_v53, %v1265_v52  ;;  %vm1273_vm1 = vweird.f32 %v1699_v53 }
 0x8b9   : > { %vm1274_vm4 = vmor %vm1272_vm2, %vm1273_vm1 }
 0x8ba   : > { %v1268_v55 = vmul.f32 %v1699_v53, %v1267_v54 }
 0x8bc   : > { %v1269_v56 = vmul.f32 0.5, %v1268_v55 }
 0x8be   : > { %v1270_v57 = vsub.f32 1.5, %v1269_v56 }
 0x8c0   : > { %v1271_v58 = vmul.f32 %v1699_v53, %v1270_v57 }
 0x8c2   : > { %v1275_v46 = vsel %vm1274_vm4, %v1699_v53, %v1271_v58 }
 0x8c3   : > { %v1276_v59 = vmul.f32 %v1275_v46, %v1259_v47 }
 0x8c5   : > { %v1277_v60 = vmul.f32 %v2138_v2, %v1276_v59 }
 0x8c7   : > { %v1278_v61 = vadd.f32 %v2143_v4, %v1277_v60 }
 0x8c9   : > { %1279 = vst.msk [vmem:[%s2015_s13] sm:$0xff] %vm1072_vm8, %v1278_v61 }
 0x8ca   : > { %1755 = shalt.err (!%p1752_p2)
}
 0x8cb   : > { %1575 = dma.vmem_to_hbm [thread:$0]  (%p1976_p3), %s1301_s30, 128, %s1303_s17, %s1281_s21  }
 0x8cc PF: > { %s2308_s13 = sld [smem:[#allocation18_spill]] }
 0x8cd   : > { %s2309_s20 = sld [smem:[#allocation12_spill]] }
 0x8d2   : > { %p1586_p4 = scmp.ge.s32.totalorder %s2308_s13, 2 }
 0x8d3   : > { %s1332_s1 = sand.u32 1, %s2309_s20  }
 0x8d4   : > { %p1580_p5 = pnand %p1586_p4, %p1985_p8  ;;  %s1333_s2 = scalar_lea.sflag [#allocation7], %s1332_s1 }
 0x8d6   : > { %p1581_p6 = pneg %p1580_p5 }
 0x8d8   : > { %1789 = dma.done.wait (%p1581_p6), %s1333_s2, 128  }
 0x8d9   : > { %1791 = vsyncadd (%p1581_p6), %s1333_s2, 4294967168  ;;  %s1343_s3 = scalar_lea.sflag [#allocation9], %s1332_s1 }
 0x8da   : > { %1793 = dma.done.wait (%p1581_p6), %s1343_s3, 512  }
 0x8db   : > { %1795 = vsyncadd (%p1581_p6), %s1343_s3, 4294966784  ;;  %s32_s25 = sadd.s32 1, %s2308_s13   ;;  %s2311_s18 = sld [smem:[#allocation13_spill]] }
 0x8dc   : > { %p29_p7 = scmp.ge.s32.totalorder %s32_s25, 6   ;;  %s2312_s19 = sld [smem:[#allocation14_spill]] }
 0x8dd   : > { %s2313_s20 = sld [smem:[#allocation23_spill]] }
 0x8de   : > { %s2314_s21 = sld [smem:[#allocation16_spill]]  ;;  %31 = sbr.rel (!%p29_p7) target bundleno = 15 (0xf), region = 146 }
 0x8df   : > { %s2315_s22 = sld [smem:[#allocation17_spill]] }
 0x8e0   : > { %s2316_s23 = sld [smem:[#allocation19_spill]] }
 0x8e1   : > { %s2317_s24 = sld [smem:[#allocation21_spill]] }
 0x8e3   :  { %1349 = vsyncpa [#allocation7], 1 }
 0x8e4   :  { %1351 = vsyncpa [#allocation7 + $0x1], 1 }
 0x8e5   :  { %1352 = vsyncpa [#allocation9], 1 }
 0x8e6   :  { %1354 = vsyncpa [#allocation9 + $0x1], 1 }

</bundles_post_ra>
